<compile_context>
chip_gen: v6e
topology: v6e:2x2x1
jax: 0.10.0
libtpu: 0.0.40
codegen_flags: <defaults>
</compile_context>

<pallas_src>
import jax
import jax.numpy as jnp
from jax.experimental import pallas as pl
from jax.experimental.pallas import tpu as pltpu

D_IN, D_HID = 1024, 512


def _round_up(x, m):
    return ((x + m - 1) // m) * m


def disc_feat_kernel(x_ref, w1_ref, b1_ref, w2_ref, b2_ref, o_ref):
    # In-kernel bf16 cast of the x tile: VPU work hidden under the MXU, avoids a
    # separate HBM cast pass in the wrapper.
    x_bf = x_ref[...].astype(jnp.bfloat16)
    # fc12: (TB, 1024) bf16 @ (1024, 512) bf16 on the MXU, f32 accumulation.
    h = jnp.dot(x_bf, w1_ref[...], preferred_element_type=jnp.float32)
    # bias + ReLU in f32 on the VPU.
    h = jnp.maximum(h + b1_ref[...], 0.0)
    # Dropout(p=0.5) in eval mode is identity (inference semantics).
    # TODO(synk): training-mode dropout would use pltpu.prng_seed /
    #             pltpu.stateful_bernoulli and rescale by 1/(1-p).
    # fc13 as a lane-dense broadcast multiply + lane reduction (w2 stored (1, 512)):
    # rides VPU/XLU slots under the MXU instead of a padded 1-column MXU matmul.
    logits = jnp.sum(h * w2_ref[...], axis=-1, keepdims=True) + b2_ref[0, 0]
    # sigmoid (EUP).
    o_ref[...] = jax.nn.sigmoid(logits).astype(o_ref.dtype)


def disc_feat_forward(x_feat, w1_bf, b1, w2_row, b2, *, max_tile_b=2048):
    """Disc_feat forward.

    x_feat: (B, 1024) f32 (or bf16). w1_bf: (1024, 512) bf16 ((in, out) layout).
    b1: (1, 512) f32. w2_row: (1, 512) f32. b2: (1, 1) f32.
    Returns (B, 1) f32 in [0, 1].
    """
    B, d_in = x_feat.shape
    assert d_in == D_IN
    assert w1_bf.shape == (D_IN, D_HID)
    assert b1.shape == (1, D_HID)
    assert w2_row.shape == (1, D_HID)
    assert b2.shape == (1, 1)

    # Params are expected pre-converted by init_params; only cast if a caller
    # hands us something else (keeps the common path free of per-call HBM casts).
    if w1_bf.dtype != jnp.bfloat16:
        w1_bf = w1_bf.astype(jnp.bfloat16)
    if b1.dtype != jnp.float32:
        b1 = b1.astype(jnp.float32)
    if w2_row.dtype != jnp.float32:
        w2_row = w2_row.astype(jnp.float32)
    if b2.dtype != jnp.float32:
        b2 = b2.astype(jnp.float32)
    # x stays in its native float dtype; the kernel casts to bf16 on the fly.
    if x_feat.dtype not in (jnp.float32, jnp.bfloat16):
        x_feat = x_feat.astype(jnp.float32)
    x_itemsize = jnp.dtype(x_feat.dtype).itemsize

    # Batch tile: single block for small B (block == full dim is always legal).
    # For larger B use up to max_tile_b rows (multiple of 256), but cap so the
    # grid has >= 2 steps: the "parallel" batch axis then shards across both
    # TensorCores on v7x (no effect on single-TC v5e/v6e).
    if B <= 256:
        tile_b = B
    else:
        tile_b = min(max_tile_b, _round_up(pl.cdiv(B, 2), 256))
    grid = (pl.cdiv(B, tile_b),)

    # Exact per-tile VMEM accounting (kept <= 40 MiB so v7x's 64 MiB/TC has slack).
    vmem_bytes = (
        2 * tile_b * D_IN * x_itemsize   # double-buffered x tiles
        + tile_b * D_IN * 2              # in-kernel bf16 copy of the x tile
        + 1 * D_IN * D_HID * 2           # bf16 w1, single-buffered (Buffered(1))
        + 2 * 8 * D_HID * 4              # b1 + w2 (sublane-padded to 8 rows)
        + tile_b * D_HID * 4             # f32 fc12/ReLU intermediate
        + 2 * tile_b * 128 * 4           # double-buffered out tiles (lane-padded)
    )
    vmem_limit = int(min(max(vmem_bytes + (4 << 20), 16 << 20), 40 << 20))

    cost = pl.CostEstimate(
        flops=2 * B * D_IN * D_HID + 4 * B * D_HID,
        transcendentals=2 * B,  # sigmoid = exp + reciprocal
        bytes_accessed=(
            x_feat.size * x_itemsize + w1_bf.size * 2
            + b1.size * 4 + w2_row.size * 4 + b2.size * 4 + B * 4
        ),
    )

    def _call(single_buffer_invariants):
        # Grid-invariant operands (constant index_map) don't need double
        # buffering; Buffered(1) drops the useless second VMEM buffer (~1 MiB
        # for w1) — matters most on v7x (64 MiB VMEM) with 2048-row tiles.
        inv = dict(pipeline_mode=pl.Buffered(1)) if single_buffer_invariants else {}
        return pl.pallas_call(
            disc_feat_kernel,
            out_shape=jax.ShapeDtypeStruct((B, 1), jnp.float32),
            grid_spec=pl.GridSpec(
                grid=grid,
                in_specs=[
                    pl.BlockSpec((tile_b, D_IN), lambda i: (i, 0)),          # x tile
                    pl.BlockSpec((D_IN, D_HID), lambda i: (0, 0), **inv),    # w1
                    pl.BlockSpec((1, D_HID), lambda i: (0, 0), **inv),       # b1
                    pl.BlockSpec((1, D_HID), lambda i: (0, 0), **inv),       # w2
                    pl.BlockSpec(memory_space=pltpu.MemorySpace.SMEM),       # b2 scalar
                ],
                # Output is tiny (4 B/row); keep the simple (tile_b, 1) block.
                # A lane-dense (1, tile_b) layout + XLU transpose is possible but
                # only worth it if the store epilogue shows up in the bundle.
                out_specs=pl.BlockSpec((tile_b, 1), lambda i: (i, 0)),
            ),
            compiler_params=pltpu.CompilerParams(
                dimension_semantics=("parallel",),
                vmem_limit_bytes=vmem_limit,
            ),
            cost_estimate=cost,
        )(x_feat, w1_bf, b1, w2_row, b2)

    try:
        return _call(True)
    except Exception:  # jax versions without pipeline_mode support on TPU pallas_call
        return _call(False)


def init_params(key):
    """Deterministic synthetic params, pre-converted to their kernel dtypes.

    w1 is stored (in, out) — transpose of PyTorch's (out, in) — so the kernel
    computes y = x @ W + b; w2 is stored lane-dense as (1, 512). Converting w1
    to bf16 here (once) removes a per-forward-call HBM cast pass.
    """
    k1, k2, k3, k4 = jax.random.split(key, 4)
    bound1 = 1.0 / jnp.sqrt(D_IN)
    bound2 = 1.0 / jnp.sqrt(D_HID)
    w1 = jax.random.uniform(k1, (D_IN, D_HID), jnp.float32, -bound1, bound1)
    b1 = jax.random.uniform(k2, (1, D_HID), jnp.float32, -bound1, bound1)
    w2_row = jax.random.uniform(k3, (1, D_HID), jnp.float32, -bound2, bound2)
    b2 = jax.random.uniform(k4, (1, 1), jnp.float32, -bound2, bound2)
    return w1.astype(jnp.bfloat16), b1, w2_row, b2


if __name__ == "__main__":
    key = jax.random.PRNGKey(0)
    k_x, k_p, k_x2 = jax.random.split(key, 3)

    w1_bf, b1, w2_row, b2 = init_params(k_p)
    w1_f32 = w1_bf.astype(jnp.float32)  # f32 view of the bf16 weights for the ref

    def reference(x):
        # Plain-JAX f32 reference (eval-mode dropout = identity); the kernel's
        # only extra rounding vs this is the in-kernel bf16 cast of x and the
        # bf16 MXU inputs, so compare with a small absolute tolerance.
        h = jnp.maximum(
            jnp.dot(x, w1_f32, precision=jax.lax.Precision.HIGHEST) + b1, 0.0
        )
        return jax.nn.sigmoid(jnp.sum(h * w2_row, axis=-1, keepdims=True) + b2)

    # Small single-tile case.
    B = 8
    x_feat = jax.random.normal(k_x, (B, D_IN), jnp.float32)
    out = jax.block_until_ready(disc_feat_forward(x_feat, w1_bf, b1, w2_row, b2))
    ref = reference(x_feat)
    assert out.shape == (B, 1)
    assert jnp.allclose(out, ref, atol=5e-3), float(jnp.max(jnp.abs(out - ref)))

    # Multi-tile case (>= 2 grid steps, ragged last tile) exercising the batch grid.
    B2 = 300
    x2 = jax.random.normal(k_x2, (B2, D_IN), jnp.float32)
    out2 = jax.block_until_ready(disc_feat_forward(x2, w1_bf, b1, w2_row, b2))
    ref2 = reference(x2)
    assert out2.shape == (B2, 1)
    assert jnp.allclose(out2, ref2, atol=5e-3), float(jnp.max(jnp.abs(out2 - ref2)))

    print("KERNEL_OK")
</pallas_src>

<mosaic_0001>
module attributes {stable_mosaic.version = 11 : i64} {
  func.func @disc_feat_kernel(%arg0: i32, %arg1: memref<8x1024xf32, #tpu.memory_space<vmem>>, %arg2: memref<1024x512xbf16, #tpu.memory_space<vmem>>, %arg3: memref<1x512xf32, #tpu.memory_space<vmem>>, %arg4: memref<1x512xf32, #tpu.memory_space<vmem>>, %arg5: memref<1x1xf32, #tpu.memory_space<smem>>, %arg6: memref<8x1xf32, #tpu.memory_space<vmem>>) attributes {dimension_semantics = [#tpu.dimension_semantics<parallel>], iteration_bounds = array<i64: 1>, scalar_prefetch = 0 : i64, scratch_operands = 0 : i64, tpu.core_type = #tpu.core_type<tc>, window_params = [{transform_indices = @transform_0, window_bounds = array<i64: 8, 1024>}, {pipeline_mode = #tpu.pipeline_mode<synchronous>, transform_indices = @transform_1, window_bounds = array<i64: 1024, 512>}, {pipeline_mode = #tpu.pipeline_mode<synchronous>, transform_indices = @transform_2, window_bounds = array<i64: 1, 512>}, {pipeline_mode = #tpu.pipeline_mode<synchronous>, transform_indices = @transform_3, window_bounds = array<i64: 1, 512>}, {transform_indices = @transform_4, window_bounds = array<i64: 1, 1>}, {transform_indices = @transform_5, window_bounds = array<i64: 8, 1>}]} {
    %c0 = arith.constant 0 : index
    %c0_0 = arith.constant 0 : index
    %0 = vector.load %arg1[%c0, %c0_0] : memref<8x1024xf32, #tpu.memory_space<vmem>>, vector<8x1024xf32>
    %1 = arith.truncf %0 : vector<8x1024xf32> to vector<8x1024xbf16>
    %c0_1 = arith.constant 0 : index
    %c0_2 = arith.constant 0 : index
    %2 = vector.load %arg2[%c0_1, %c0_2] : memref<1024x512xbf16, #tpu.memory_space<vmem>>, vector<1024x512xbf16>
    %cst = arith.constant dense<0.000000e+00> : vector<8x512xf32>
    %3 = tpu.matmul %1, %2, %cst {dimension_numbers = #tpu.dot_dimension_numbers<[1], [0], [0], [1], [0, 0, 1, 1], [], []>} : vector<8x1024xbf16>, vector<1024x512xbf16>, vector<8x512xf32> -> vector<8x512xf32>
    %c0_3 = arith.constant 0 : index
    %c0_4 = arith.constant 0 : index
    %4 = vector.load %arg3[%c0_3, %c0_4] : memref<1x512xf32, #tpu.memory_space<vmem>>, vector<1x512xf32>
    %5 = vector.broadcast %4 : vector<1x512xf32> to vector<8x512xf32>
    %6 = arith.addf %3, %5 : vector<8x512xf32>
    %cst_5 = arith.constant 0.000000e+00 : f32
    %7 = vector.broadcast %cst_5 : f32 to vector<8x512xf32>
    %8 = arith.maximumf %6, %7 : vector<8x512xf32>
    %c0_6 = arith.constant 0 : index
    %c0_7 = arith.constant 0 : index
    %9 = vector.load %arg4[%c0_6, %c0_7] : memref<1x512xf32, #tpu.memory_space<vmem>>, vector<1x512xf32>
    %10 = vector.broadcast %9 : vector<1x512xf32> to vector<8x512xf32>
    %11 = arith.mulf %8, %10 : vector<8x512xf32>
    %cst_8 = arith.constant dense<0.000000e+00> : vector<8xf32>
    %12 = vector.multi_reduction <add>, %11, %cst_8 [1] : vector<8x512xf32> to vector<8xf32>
    %13 = vector.shape_cast %12 : vector<8xf32> to vector<8x1xf32>
    %c0_9 = arith.constant 0 : index
    %c0_10 = arith.constant 0 : index
    %14 = memref.load %arg5[%c0_9, %c0_10] : memref<1x1xf32, #tpu.memory_space<smem>>
    %15 = vector.broadcast %14 : f32 to vector<8x1xf32>
    %16 = arith.addf %13, %15 : vector<8x1xf32>
    %17 = arith.negf %16 : vector<8x1xf32>
    %18 = math.exp %17 : vector<8x1xf32>
    %cst_11 = arith.constant 1.000000e+00 : f32
    %19 = vector.broadcast %cst_11 : f32 to vector<8x1xf32>
    %20 = arith.addf %19, %18 : vector<8x1xf32>
    %21 = arith.divf %19, %20 : vector<8x1xf32>
    %c0_12 = arith.constant 0 : index
    %c0_13 = arith.constant 0 : index
    %22 = vector.load %arg6[%c0_12, %c0_13] : memref<8x1xf32, #tpu.memory_space<vmem>>, vector<8x1xf32>
    tpu.vector_store %arg6[%c0_12, %c0_13], %21 {strides = array<i32>} : memref<8x1xf32, #tpu.memory_space<vmem>>, vector<8x1xf32>,
    return
  }
  func.func @transform_0(%arg0: i32) -> (i32, i32) {
    %c0_i32 = arith.constant 0 : i32
    %c0_i32_0 = arith.constant 0 : i32
    return %arg0, %c0_i32 : i32, i32
  }
  func.func @transform_1(%arg0: i32) -> (i32, i32) {
    %c0_i32 = arith.constant 0 : i32
    %c0_i32_0 = arith.constant 0 : i32
    %c0_i32_1 = arith.constant 0 : i32
    return %c0_i32, %c0_i32_0 : i32, i32
  }
  func.func @transform_2(%arg0: i32) -> (i32, i32) {
    %c0_i32 = arith.constant 0 : i32
    %c0_i32_0 = arith.constant 0 : i32
    %c0_i32_1 = arith.constant 0 : i32
    return %c0_i32, %c0_i32_0 : i32, i32
  }
  func.func @transform_3(%arg0: i32) -> (i32, i32) {
    %c0_i32 = arith.constant 0 : i32
    %c0_i32_0 = arith.constant 0 : i32
    %c0_i32_1 = arith.constant 0 : i32
    return %c0_i32, %c0_i32_0 : i32, i32
  }
  func.func @transform_4(%arg0: i32) -> (i32, i32) {
    %c0_i32 = arith.constant 0 : i32
    %c0_i32_0 = arith.constant 0 : i32
    %c0_i32_1 = arith.constant 0 : i32
    return %c0_i32, %c0_i32_0 : i32, i32
  }
  func.func @transform_5(%arg0: i32) -> (i32, i32) {
    %c0_i32 = arith.constant 0 : i32
    %c0_i32_0 = arith.constant 0 : i32
    return %arg0, %c0_i32 : i32, i32
  }
}

module attributes {stable_mosaic.version = 11 : i64} {
  func.func @disc_feat_kernel(%arg0: i32, %arg1: memref<8x1024xf32, #tpu.memory_space<vmem>>, %arg2: memref<1024x512xbf16, #tpu.memory_space<vmem>>, %arg3: memref<1x512xf32, #tpu.memory_space<vmem>>, %arg4: memref<1x512xf32, #tpu.memory_space<vmem>>, %arg5: memref<1x1xf32, #tpu.memory_space<smem>>, %arg6: memref<8x1xf32, #tpu.memory_space<vmem>>) attributes {dimension_semantics = [#tpu.dimension_semantics<parallel>], iteration_bounds = array<i64: 1>, scalar_prefetch = 0 : i64, scratch_operands = 0 : i64, tpu.core_type = #tpu.core_type<tc>, window_params = [{transform_indices = @transform_0, window_bounds = array<i64: 8, 1024>}, {pipeline_mode = #tpu.pipeline_mode<synchronous>, transform_indices = @transform_1, window_bounds = array<i64: 1024, 512>}, {pipeline_mode = #tpu.pipeline_mode<synchronous>, transform_indices = @transform_2, window_bounds = array<i64: 1, 512>}, {pipeline_mode = #tpu.pipeline_mode<synchronous>, transform_indices = @transform_3, window_bounds = array<i64: 1, 512>}, {transform_indices = @transform_4, window_bounds = array<i64: 1, 1>}, {transform_indices = @transform_5, window_bounds = array<i64: 8, 1>}]} {
    %c0 = arith.constant 0 : index
    %c0_0 = arith.constant 0 : index
    %0 = vector.load %arg1[%c0, %c0_0] : memref<8x1024xf32, #tpu.memory_space<vmem>>, vector<8x1024xf32>
    %1 = arith.truncf %0 : vector<8x1024xf32> to vector<8x1024xbf16>
    %c0_1 = arith.constant 0 : index
    %c0_2 = arith.constant 0 : index
    %2 = vector.load %arg2[%c0_1, %c0_2] : memref<1024x512xbf16, #tpu.memory_space<vmem>>, vector<1024x512xbf16>
    %cst = arith.constant dense<0.000000e+00> : vector<8x512xf32>
    %3 = tpu.matmul %1, %2, %cst {dimension_numbers = #tpu.dot_dimension_numbers<[1], [0], [0], [1], [0, 0, 1, 1], [], []>} : vector<8x1024xbf16>, vector<1024x512xbf16>, vector<8x512xf32> -> vector<8x512xf32>
    %c0_3 = arith.constant 0 : index
    %c0_4 = arith.constant 0 : index
    %4 = vector.load %arg3[%c0_3, %c0_4] : memref<1x512xf32, #tpu.memory_space<vmem>>, vector<1x512xf32>
    %5 = vector.broadcast %4 : vector<1x512xf32> to vector<8x512xf32>
    %6 = arith.addf %3, %5 : vector<8x512xf32>
    %cst_5 = arith.constant 0.000000e+00 : f32
    %7 = vector.broadcast %cst_5 : f32 to vector<8x512xf32>
    %8 = arith.maximumf %6, %7 : vector<8x512xf32>
    %c0_6 = arith.constant 0 : index
    %c0_7 = arith.constant 0 : index
    %9 = vector.load %arg4[%c0_6, %c0_7] : memref<1x512xf32, #tpu.memory_space<vmem>>, vector<1x512xf32>
    %10 = vector.broadcast %9 : vector<1x512xf32> to vector<8x512xf32>
    %11 = arith.mulf %8, %10 : vector<8x512xf32>
    %cst_8 = arith.constant dense<0.000000e+00> : vector<8xf32>
    %12 = vector.multi_reduction <add>, %11, %cst_8 [1] : vector<8x512xf32> to vector<8xf32>
    %13 = vector.shape_cast %12 : vector<8xf32> to vector<8x1xf32>
    %c0_9 = arith.constant 0 : index
    %c0_10 = arith.constant 0 : index
    %14 = memref.load %arg5[%c0_9, %c0_10] : memref<1x1xf32, #tpu.memory_space<smem>>
    %15 = vector.broadcast %14 : f32 to vector<8x1xf32>
    %16 = arith.addf %13, %15 : vector<8x1xf32>
    %17 = arith.negf %16 : vector<8x1xf32>
    %18 = math.exp %17 : vector<8x1xf32>
    %cst_11 = arith.constant 1.000000e+00 : f32
    %19 = vector.broadcast %cst_11 : f32 to vector<8x1xf32>
    %20 = arith.addf %19, %18 : vector<8x1xf32>
    %21 = arith.divf %19, %20 : vector<8x1xf32>
    %c0_12 = arith.constant 0 : index
    %c0_13 = arith.constant 0 : index
    %22 = vector.load %arg6[%c0_12, %c0_13] : memref<8x1xf32, #tpu.memory_space<vmem>>, vector<8x1xf32>
    tpu.vector_store %arg6[%c0_12, %c0_13], %21 {strides = array<i32>} : memref<8x1xf32, #tpu.memory_space<vmem>>, vector<8x1xf32>,
    return
  }
  func.func @transform_0(%arg0: i32) -> (i32, i32) {
    %c0_i32 = arith.constant 0 : i32
    %c0_i32_0 = arith.constant 0 : i32
    return %arg0, %c0_i32 : i32, i32
  }
  func.func @transform_1(%arg0: i32) -> (i32, i32) {
    %c0_i32 = arith.constant 0 : i32
    %c0_i32_0 = arith.constant 0 : i32
    %c0_i32_1 = arith.constant 0 : i32
    return %c0_i32, %c0_i32_0 : i32, i32
  }
  func.func @transform_2(%arg0: i32) -> (i32, i32) {
    %c0_i32 = arith.constant 0 : i32
    %c0_i32_0 = arith.constant 0 : i32
    %c0_i32_1 = arith.constant 0 : i32
    return %c0_i32, %c0_i32_0 : i32, i32
  }
  func.func @transform_3(%arg0: i32) -> (i32, i32) {
    %c0_i32 = arith.constant 0 : i32
    %c0_i32_0 = arith.constant 0 : i32
    %c0_i32_1 = arith.constant 0 : i32
    return %c0_i32, %c0_i32_0 : i32, i32
  }
  func.func @transform_4(%arg0: i32) -> (i32, i32) {
    %c0_i32 = arith.constant 0 : i32
    %c0_i32_0 = arith.constant 0 : i32
    %c0_i32_1 = arith.constant 0 : i32
    return %c0_i32, %c0_i32_0 : i32, i32
  }
  func.func @transform_5(%arg0: i32) -> (i32, i32) {
    %c0_i32 = arith.constant 0 : i32
    %c0_i32_0 = arith.constant 0 : i32
    return %arg0, %c0_i32 : i32, i32
  }
}

</mosaic_0001>

<bundles_post_ra>
// kernel: tpu_custom_call.1
= control target key start
LH: loop header
LB: loop body
LE: loop exit
PB: predicated region body
PF: predicated region fallthrough
CT: control target
= control target key end

     0   :  { %11 = vsyncpa [#allocation4], 0  ;;  %s2817_s0 = inlined_call_operand.hbm [shape: f32[8,1024], index: 0, kind: input, shape index: {}]   ;;  %s2818_s1 = inlined_call_operand.hbm [shape: bf16[1024,512], index: 1, kind: input, shape index: {}]   ;;  %s2819_s2 = inlined_call_operand.vmem [shape: f32[1,512], index: 2, kind: input, shape index: {}]   ;;  %s2820_s3 = inlined_call_operand.hbm [shape: f32[1,512], index: 3, kind: input, shape index: {}]   ;;  %s2821_s4 = inlined_call_operand.<no memory space> [shape: f32[1,1], index: 4, kind: input, shape index: {}]   ;;  %s2822_s5 = inlined_call_operand.vmem [shape: f32[8,1], index: 5, kind: output, shape index: {}]  }
   0x1   :  { %12 = vsyncpa [#allocation6], 0  ;;  %s2726_s18 = smov [#allocation5]  }
   0x2   :  { %s28_s19 = sshll.u32 %s2726_s18, 4  ;;  %s29_s19 = int_to_ptr.vmem [resolvable:$true] %s28_s19 }
   0x3   :  { %s2670_s20 = scalar_lea.vmem %s29_s19, 32768  ;;  %p2675_p1 = scmp.lt.s32.totalorder %s29_s19, %s29_s19 }
   0x4   :  { %p2671_p0 = scmp.ne.s32.totalorder %s29_s19, %s2670_s20  ;;  %p2676_p2 = scmp.lt.s32.totalorder %s2670_s20, %s2670_s20 }
   0x6   :  { %p2677_p3 = por %p2676_p2, %p2675_p1 }
   0x8   :  { %p2678_p4 = pnand %p2677_p3, %p2671_p0 }
   0xa   :  { %2681 = shalt.err (!%p2678_p4)
}
   0xb   :  { %s2727_s21 = smov 256   ;;  %s2728_s22 = smov 16  }
   0xc   :  { %34 = dma.hbm_to_vmem [thread:$0]  %s2818_s1, 32768, %s29_s19, [#allocation6], %s2727_s21, %s2727_s21, %s2728_s22  }
   0xd   :  { %s2729_s25 = smov [#allocation3]   ;;  %s2730_s27 = smov [#allocation7]  }
   0xe   :  { %s19_s26 = sshll.u32 %s2729_s25, 4  ;;  %s43_s28 = sshll.u32 %s2730_s27, 4  ;;  %s20_s26 = int_to_ptr.vmem [resolvable:$true] %s19_s26  ;;  %s44_s28 = int_to_ptr.vmem [resolvable:$true] %s43_s28 }
   0xf   :  { %s2690_s29 = scalar_lea.vmem %s20_s26, 1024  ;;  %p2695_p6 = scmp.lt.s32.totalorder %s20_s26, %s20_s26 }
  0x10   :  { %p2691_p5 = scmp.ne.s32.totalorder %s20_s26, %s2690_s29  ;;  %p2696_p7 = scmp.lt.s32.totalorder %s2690_s29, %s2690_s29 }
  0x12   :  { %p2697_p8 = por %p2696_p7, %p2695_p6 }
  0x14   :  { %p2698_p9 = pnand %p2697_p8, %p2691_p5 }
  0x16   :  { %2701 = shalt.err (!%p2698_p9)
}
  0x17   :  { %22 = dma.hbm_to_vmem [thread:$0]  %s2817_s0, 1024, %s20_s26, [#allocation4]  }
  0x18   :  { %s2710_s7 = scalar_lea.vmem %s44_s28, 64  ;;  %p2715_p11 = scmp.lt.s32.totalorder %s44_s28, %s44_s28 }
  0x19   :  { %p2711_p10 = scmp.ne.s32.totalorder %s44_s28, %s2710_s7  ;;  %p2716_p12 = scmp.lt.s32.totalorder %s2710_s7, %s2710_s7 }
  0x1b   :  { %p2717_p13 = por %p2716_p12, %p2715_p11 }
  0x1d   :  { %p2718_p0 = pnand %p2717_p13, %p2711_p10 }
  0x1f   :  { %2721 = shalt.err (!%p2718_p0)
}
  0x20   :  { %46 = dma.hbm_to_vmem [thread:$0]  %s2820_s3, 64, %s44_s28, [#allocation6]  }
  0x21   :  { %2722 = dma.done.wait [#allocation4], 1024  }
  0x22   :  { %2723 = vsyncadd [#allocation4], 4294966272 }
  0x23   :  { %2724 = dma.done.wait [#allocation6], 32832  }
  0x24   :  { %2725 = vsyncadd [#allocation6], 4294934464  ;;  %v2274_v0 = vld [vmem:[#allocation5 + $0xe4] ss:$16 sps:$4 sm:$0xff]   ;;  %v2278_v2 = vld [vmem:[#allocation5 + $0xe0] ss:$16 sps:$4 sm:$0xff]  }
  0x25   :  { %v2276_v1 = vld [vmem:[#allocation5 + $0x2e4] ss:$16 sps:$4 sm:$0xff]   ;;  %1632 = vmatprep.subr.bf16.mxu0 %v2274_v0  ;;  %v2279_v3 = vld [vmem:[#allocation5 + $0x2e0] ss:$16 sps:$4 sm:$0xff]   ;;  %v59_v46 = vld [vmem:[#allocation3 + $0x8] sm:$0xff]  ;;  %vm2004_vm0 = vcmask 7168  }
  0x26   :  { %1673 = vmatprep.subr.bf16.mxu1 %v2276_v1  ;;  %v2280_v4 = vld [vmem:[#allocation5 + $0xc4] ss:$16 sps:$4 sm:$0xff]   ;;  %1633 = vmatpush1.bf16.msra.mxu0 %v2278_v2  ;;  %v2284_v6 = vld [vmem:[#allocation5 + $0xc0] ss:$16 sps:$4 sm:$0xff]   ;;  %v2770_v49 = vpack.c.bf16 %v59_v46, %v59_v46  ;;  %v61_v50 = vld [vmem:[#allocation3 + $0x18] sm:$0xff] }
  0x27   :  { %1674 = vmatpush1.bf16.msra.mxu1 %v2279_v3  ;;  %v2282_v5 = vld [vmem:[#allocation5 + $0x2c4] ss:$16 sps:$4 sm:$0xff]   ;;  %1634 = vmatprep.subr.bf16.mxu0 %v2280_v4  ;;  %v2285_v7 = vld [vmem:[#allocation5 + $0x2c0] ss:$16 sps:$4 sm:$0xff]   ;;  %v2772_v52 = vpack.c.bf16 %v61_v50, %v61_v50 }
  0x28   :  { %1675 = vmatprep.subr.bf16.mxu1 %v2282_v5  ;;  %v2286_v8 = vld [vmem:[#allocation5 + $0xa4] ss:$16 sps:$4 sm:$0xff]   ;;  %v2290_v10 = vld [vmem:[#allocation5 + $0xa0] ss:$16 sps:$4 sm:$0xff]   ;;  %1664 = vmatprep.mubr.bf16.mxu0 %v2770_v49 }
  0x29   :  { %v2288_v9 = vld [vmem:[#allocation5 + $0x2a4] ss:$16 sps:$4 sm:$0xff]   ;;  %v2291_v11 = vld [vmem:[#allocation5 + $0x2a0] ss:$16 sps:$4 sm:$0xff]   ;;  %1705 = vmatprep.mubr.bf16.mxu1 %v2772_v52 }
  0x2a   :  { %1635 = vmatpush1.bf16.msra.mxu0 %v2284_v6  ;;  %v2292_v12 = vld [vmem:[#allocation5 + $0x84] ss:$16 sps:$4 sm:$0xff]   ;;  %v2296_v14 = vld [vmem:[#allocation5 + $0x80] ss:$16 sps:$4 sm:$0xff]  }
  0x2b   :  { %1676 = vmatpush1.bf16.msra.mxu1 %v2285_v7  ;;  %1636 = vmatprep.subr.bf16.mxu0 %v2286_v8  ;;  %v2294_v13 = vld [vmem:[#allocation5 + $0x284] ss:$16 sps:$4 sm:$0xff]   ;;  %v2297_v15 = vld [vmem:[#allocation5 + $0x280] ss:$16 sps:$4 sm:$0xff]  }
  0x2c   :  { %1677 = vmatprep.subr.bf16.mxu1 %v2288_v9  ;;  %v2298_v16 = vld [vmem:[#allocation5 + $0x64] ss:$16 sps:$4 sm:$0xff]   ;;  %v2302_v18 = vld [vmem:[#allocation5 + $0x60] ss:$16 sps:$4 sm:$0xff]  }
  0x2d   :  { %v2300_v17 = vld [vmem:[#allocation5 + $0x264] ss:$16 sps:$4 sm:$0xff]   ;;  %v2303_v19 = vld [vmem:[#allocation5 + $0x260] ss:$16 sps:$4 sm:$0xff]  }
  0x2e   :  { %1637 = vmatpush1.bf16.msra.mxu0 %v2290_v10  ;;  %v2304_v20 = vld [vmem:[#allocation5 + $0x44] ss:$16 sps:$4 sm:$0xff]   ;;  %v2308_v22 = vld [vmem:[#allocation5 + $0x40] ss:$16 sps:$4 sm:$0xff]  }
  0x2f   :  { %1678 = vmatpush1.bf16.msra.mxu1 %v2291_v11  ;;  %1638 = vmatprep.subr.bf16.mxu0 %v2292_v12  ;;  %v2306_v21 = vld [vmem:[#allocation5 + $0x244] ss:$16 sps:$4 sm:$0xff]   ;;  %v2309_v23 = vld [vmem:[#allocation5 + $0x240] ss:$16 sps:$4 sm:$0xff]  }
  0x30   :  { %1679 = vmatprep.subr.bf16.mxu1 %v2294_v13  ;;  %v2310_v24 = vld [vmem:[#allocation5 + $0x24] ss:$16 sps:$4 sm:$0xff]   ;;  %v2314_v26 = vld [vmem:[#allocation5 + $0x20] ss:$16 sps:$4 sm:$0xff]  }
  0x31   :  { %v2312_v25 = vld [vmem:[#allocation5 + $0x224] ss:$16 sps:$4 sm:$0xff]   ;;  %v2315_v27 = vld [vmem:[#allocation5 + $0x220] ss:$16 sps:$4 sm:$0xff]  }
  0x32   :  { %1639 = vmatpush1.bf16.msra.mxu0 %v2296_v14  ;;  %v2316_v28 = vld [vmem:[#allocation5 + $0x4] ss:$16 sps:$4 sm:$0xff]   ;;  %v2320_v30 = vld [vmem:[#allocation5] ss:$16 sps:$4 sm:$0xff]  }
  0x33   :  { %1680 = vmatpush1.bf16.msra.mxu1 %v2297_v15  ;;  %1640 = vmatprep.subr.bf16.mxu0 %v2298_v16  ;;  %v2318_v29 = vld [vmem:[#allocation5 + $0x204] ss:$16 sps:$4 sm:$0xff]   ;;  %v2321_v31 = vld [vmem:[#allocation5 + $0x200] ss:$16 sps:$4 sm:$0xff]  }
  0x34   :  { %1681 = vmatprep.subr.bf16.mxu1 %v2300_v17  ;;  %v2322_v32 = vld [vmem:[#allocation5 + $0x1e4] ss:$16 sps:$4 sm:$0xff]   ;;  %v2326_v34 = vld [vmem:[#allocation5 + $0x1e0] ss:$16 sps:$4 sm:$0xff]  }
  0x35   :  { %v2324_v33 = vld [vmem:[#allocation5 + $0x3e4] ss:$16 sps:$4 sm:$0xff]   ;;  %v2327_v35 = vld [vmem:[#allocation5 + $0x3e0] ss:$16 sps:$4 sm:$0xff]  }
  0x36   :  { %1641 = vmatpush1.bf16.msra.mxu0 %v2302_v18  ;;  %v2328_v36 = vld [vmem:[#allocation5 + $0x1c4] ss:$16 sps:$4 sm:$0xff]   ;;  %v2332_v38 = vld [vmem:[#allocation5 + $0x1c0] ss:$16 sps:$4 sm:$0xff]  }
  0x37   :  { %1682 = vmatpush1.bf16.msra.mxu1 %v2303_v19  ;;  %1642 = vmatprep.subr.bf16.mxu0 %v2304_v20  ;;  %v2330_v37 = vld [vmem:[#allocation5 + $0x3c4] ss:$16 sps:$4 sm:$0xff]   ;;  %v2333_v39 = vld [vmem:[#allocation5 + $0x3c0] ss:$16 sps:$4 sm:$0xff]  }
  0x38   :  { %1683 = vmatprep.subr.bf16.mxu1 %v2306_v21  ;;  %v2334_v40 = vld [vmem:[#allocation5 + $0x1a4] ss:$16 sps:$4 sm:$0xff]   ;;  %v2338_v42 = vld [vmem:[#allocation5 + $0x1a0] ss:$16 sps:$4 sm:$0xff]  }
  0x39   :  { %v2336_v41 = vld [vmem:[#allocation5 + $0x3a4] ss:$16 sps:$4 sm:$0xff]   ;;  %v2339_v43 = vld [vmem:[#allocation5 + $0x3a0] ss:$16 sps:$4 sm:$0xff]  }
  0x3a   :  { %1643 = vmatpush1.bf16.msra.mxu0 %v2308_v22  ;;  %v2340_v44 = vld [vmem:[#allocation5 + $0x184] ss:$16 sps:$4 sm:$0xff]   ;;  %v2344_v47 = vld [vmem:[#allocation5 + $0x180] ss:$16 sps:$4 sm:$0xff]  }
  0x3b   :  { %1684 = vmatpush1.bf16.msra.mxu1 %v2309_v23  ;;  %1644 = vmatprep.subr.bf16.mxu0 %v2310_v24  ;;  %v2342_v45 = vld [vmem:[#allocation5 + $0x384] ss:$16 sps:$4 sm:$0xff]   ;;  %v2345_v48 = vld [vmem:[#allocation5 + $0x380] ss:$16 sps:$4 sm:$0xff]  }
  0x3c   :  { %1685 = vmatprep.subr.bf16.mxu1 %v2312_v25  ;;  %v2346_v51 = vld [vmem:[#allocation5 + $0x164] ss:$16 sps:$4 sm:$0xff]   ;;  %v2350_v54 = vld [vmem:[#allocation5 + $0x160] ss:$16 sps:$4 sm:$0xff]  }
  0x3d   :  { %v2348_v53 = vld [vmem:[#allocation5 + $0x364] ss:$16 sps:$4 sm:$0xff]   ;;  %v2351_v55 = vld [vmem:[#allocation5 + $0x360] ss:$16 sps:$4 sm:$0xff]  }
  0x3e   :  { %1645 = vmatpush1.bf16.msra.mxu0 %v2314_v26  ;;  %v2352_v56 = vld [vmem:[#allocation5 + $0x144] ss:$16 sps:$4 sm:$0xff]   ;;  %v2356_v58 = vld [vmem:[#allocation5 + $0x140] ss:$16 sps:$4 sm:$0xff]  }
  0x3f   :  { %1686 = vmatpush1.bf16.msra.mxu1 %v2315_v27  ;;  %1646 = vmatprep.subr.bf16.mxu0 %v2316_v28  ;;  %v2354_v57 = vld [vmem:[#allocation5 + $0x344] ss:$16 sps:$4 sm:$0xff]   ;;  %v2357_v59 = vld [vmem:[#allocation5 + $0x340] ss:$16 sps:$4 sm:$0xff]  }
  0x40   :  { %1687 = vmatprep.subr.bf16.mxu1 %v2318_v29  ;;  %v2358_v60 = vld [vmem:[#allocation5 + $0x124] ss:$16 sps:$4 sm:$0xff]   ;;  %v2362_v62 = vld [vmem:[#allocation5 + $0x120] ss:$16 sps:$4 sm:$0xff]  }
  0x41   :  { %v2360_v61 = vld [vmem:[#allocation5 + $0x324] ss:$16 sps:$4 sm:$0xff]   ;;  %v2363_v63 = vld [vmem:[#allocation5 + $0x320] ss:$16 sps:$4 sm:$0xff]  }
  0x42   :  { %1647 = vmatpush1.bf16.msra.mxu0 %v2320_v30  ;;  %v2364_v0 = vld [vmem:[#allocation5 + $0x104] ss:$16 sps:$4 sm:$0xff]   ;;  %v2368_v2 = vld [vmem:[#allocation5 + $0x100] ss:$16 sps:$4 sm:$0xff]  }
  0x43   :  { %1688 = vmatpush1.bf16.msra.mxu1 %v2321_v31  ;;  %1648 = vmatprep.subr.bf16.mxu0 %v2322_v32  ;;  %v2366_v1 = vld [vmem:[#allocation5 + $0x304] ss:$16 sps:$4 sm:$0xff]   ;;  %v2369_v3 = vld [vmem:[#allocation5 + $0x300] ss:$16 sps:$4 sm:$0xff]  }
  0x44   :  { %1689 = vmatprep.subr.bf16.mxu1 %v2324_v33  ;;  %v58_v4 = vld [vmem:[#allocation3] sm:$0xff]  ;;  %v60_v5 = vld [vmem:[#allocation3 + $0x10] sm:$0xff] }
  0x45   :  { %v2372_v6 = vld [vmem:[#allocation5 + $0x4e4] ss:$16 sps:$4 sm:$0xff]   ;;  %v2776_v8 = vpack.c.bf16 %v58_v4, %v58_v4  ;;  %v2778_v9 = vpack.c.bf16 %v60_v5, %v60_v5  ;;  %v2370_v10 = vld [vmem:[#allocation5 + $0x4e0] ss:$16 sps:$4 sm:$0xff]  }
  0x46   :  { %1649 = vmatpush2.bf16.msra.mxu0 %v2326_v34  ;;  %v2375_v7 = vld [vmem:[#allocation5 + $0x6e4] ss:$16 sps:$4 sm:$0xff]   ;;  %v2373_v11 = vld [vmem:[#allocation5 + $0x6e0] ss:$16 sps:$4 sm:$0xff]   ;;  %v63_v34 = vld [vmem:[#allocation3 + $0x28] sm:$0xff] }
  0x47   :  { %1690 = vmatpush2.bf16.msra.mxu1 %v2327_v35  ;;  %1650 = vmatprep.subr.bf16.mxu0 %v2328_v36  ;;  %v2378_v12 = vld [vmem:[#allocation5 + $0x4c4] ss:$16 sps:$4 sm:$0xff]   ;;  %v2376_v14 = vld [vmem:[#allocation5 + $0x4c0] ss:$16 sps:$4 sm:$0xff]  }
  0x48   :  { %1691 = vmatprep.subr.bf16.mxu1 %v2330_v37  ;;  %v2381_v13 = vld [vmem:[#allocation5 + $0x6c4] ss:$16 sps:$4 sm:$0xff]   ;;  %v2379_v15 = vld [vmem:[#allocation5 + $0x6c0] ss:$16 sps:$4 sm:$0xff]   ;;  %v2782_v37 = vpack.c.bf16 %v63_v34, %v63_v34  ;;  %v2484_v34 = vld [vmem:[#allocation5 + $0x88] ss:$16 sps:$4 sm:$0xff]  }
  0x49   :  { %v2384_v16 = vld [vmem:[#allocation5 + $0x4a4] ss:$16 sps:$4 sm:$0xff]   ;;  %v2382_v18 = vld [vmem:[#allocation5 + $0x4a0] ss:$16 sps:$4 sm:$0xff]  }
  0x4a   :  { %1651 = vmatpush2.bf16.msra.mxu0 %v2332_v38  ;;  %v2387_v17 = vld [vmem:[#allocation5 + $0x6a4] ss:$16 sps:$4 sm:$0xff]   ;;  %v2385_v19 = vld [vmem:[#allocation5 + $0x6a0] ss:$16 sps:$4 sm:$0xff]   ;;  %v65_v38 = vld [vmem:[#allocation3 + $0x38] sm:$0xff] }
  0x4b   :  { %1692 = vmatpush2.bf16.msra.mxu1 %v2333_v39  ;;  %1652 = vmatprep.subr.bf16.mxu0 %v2334_v40  ;;  %v2390_v20 = vld [vmem:[#allocation5 + $0x484] ss:$16 sps:$4 sm:$0xff]   ;;  %v2388_v22 = vld [vmem:[#allocation5 + $0x480] ss:$16 sps:$4 sm:$0xff]   ;;  %v2784_v40 = vpack.c.bf16 %v65_v38, %v65_v38  ;;  %v2495_v38 = vld [vmem:[#allocation5 + $0x26c] ss:$16 sps:$4 sm:$0xff]  }
  0x4c   :  { %1693 = vmatprep.subr.bf16.mxu1 %v2336_v41  ;;  %v2393_v21 = vld [vmem:[#allocation5 + $0x684] ss:$16 sps:$4 sm:$0xff]   ;;  %v2391_v23 = vld [vmem:[#allocation5 + $0x680] ss:$16 sps:$4 sm:$0xff]  }
  0x4d   :  { %v2396_v24 = vld [vmem:[#allocation5 + $0x464] ss:$16 sps:$4 sm:$0xff]   ;;  %v2394_v26 = vld [vmem:[#allocation5 + $0x460] ss:$16 sps:$4 sm:$0xff]  }
  0x4e   :  { %1653 = vmatpush2.bf16.msra.mxu0 %v2338_v42  ;;  %v2399_v25 = vld [vmem:[#allocation5 + $0x664] ss:$16 sps:$4 sm:$0xff]   ;;  %v2397_v27 = vld [vmem:[#allocation5 + $0x660] ss:$16 sps:$4 sm:$0xff]  }
  0x4f   :  { %1694 = vmatpush2.bf16.msra.mxu1 %v2339_v43  ;;  %1654 = vmatprep.subr.bf16.mxu0 %v2340_v44  ;;  %v2402_v28 = vld [vmem:[#allocation5 + $0x444] ss:$16 sps:$4 sm:$0xff]   ;;  %v2400_v30 = vld [vmem:[#allocation5 + $0x440] ss:$16 sps:$4 sm:$0xff]  }
  0x50   :  { %1695 = vmatprep.subr.bf16.mxu1 %v2342_v45  ;;  %v2405_v29 = vld [vmem:[#allocation5 + $0x644] ss:$16 sps:$4 sm:$0xff]   ;;  %v2403_v31 = vld [vmem:[#allocation5 + $0x640] ss:$16 sps:$4 sm:$0xff]  }
  0x51   :  { %v2408_v32 = vld [vmem:[#allocation5 + $0x424] ss:$16 sps:$4 sm:$0xff]   ;;  %v2406_v35 = vld [vmem:[#allocation5 + $0x420] ss:$16 sps:$4 sm:$0xff]  }
  0x52   :  { %1655 = vmatpush2.bf16.msra.mxu0 %v2344_v47  ;;  %v2411_v33 = vld [vmem:[#allocation5 + $0x624] ss:$16 sps:$4 sm:$0xff]   ;;  %v2409_v36 = vld [vmem:[#allocation5 + $0x620] ss:$16 sps:$4 sm:$0xff]  }
  0x53   :  { %1696 = vmatpush2.bf16.msra.mxu1 %v2345_v48  ;;  %1656 = vmatprep.subr.bf16.mxu0 %v2346_v51  ;;  %v2414_v39 = vld [vmem:[#allocation5 + $0x404] ss:$16 sps:$4 sm:$0xff]   ;;  %v2412_v42 = vld [vmem:[#allocation5 + $0x400] ss:$16 sps:$4 sm:$0xff]  }
  0x54   :  { %1697 = vmatprep.subr.bf16.mxu1 %v2348_v53  ;;  %v2417_v41 = vld [vmem:[#allocation5 + $0x604] ss:$16 sps:$4 sm:$0xff]   ;;  %v2415_v43 = vld [vmem:[#allocation5 + $0x600] ss:$16 sps:$4 sm:$0xff]  }
  0x55   :  { %v2420_v44 = vld [vmem:[#allocation5 + $0x5e4] ss:$16 sps:$4 sm:$0xff]   ;;  %v2418_v46 = vld [vmem:[#allocation5 + $0x5e0] ss:$16 sps:$4 sm:$0xff]  }
  0x56   :  { %1657 = vmatpush2.bf16.msra.mxu0 %v2350_v54  ;;  %v2423_v45 = vld [vmem:[#allocation5 + $0x7e4] ss:$16 sps:$4 sm:$0xff]   ;;  %v2421_v47 = vld [vmem:[#allocation5 + $0x7e0] ss:$16 sps:$4 sm:$0xff]  }
  0x57   :  { %1698 = vmatpush2.bf16.msra.mxu1 %v2351_v55  ;;  %1658 = vmatprep.subr.bf16.mxu0 %v2352_v56  ;;  %v2426_v48 = vld [vmem:[#allocation5 + $0x5c4] ss:$16 sps:$4 sm:$0xff]   ;;  %v2424_v51 = vld [vmem:[#allocation5 + $0x5c0] ss:$16 sps:$4 sm:$0xff]  }
  0x58   :  { %1699 = vmatprep.subr.bf16.mxu1 %v2354_v57  ;;  %v2429_v50 = vld [vmem:[#allocation5 + $0x7c4] ss:$16 sps:$4 sm:$0xff]   ;;  %v2427_v53 = vld [vmem:[#allocation5 + $0x7c0] ss:$16 sps:$4 sm:$0xff]  }
  0x59   :  { %v2432_v54 = vld [vmem:[#allocation5 + $0x5a4] ss:$16 sps:$4 sm:$0xff]   ;;  %v2430_v56 = vld [vmem:[#allocation5 + $0x5a0] ss:$16 sps:$4 sm:$0xff]  }
  0x5a   :  { %1659 = vmatpush2.bf16.msra.mxu0 %v2356_v58  ;;  %v2435_v55 = vld [vmem:[#allocation5 + $0x7a4] ss:$16 sps:$4 sm:$0xff]   ;;  %v2433_v57 = vld [vmem:[#allocation5 + $0x7a0] ss:$16 sps:$4 sm:$0xff]  }
  0x5b   :  { %1700 = vmatpush2.bf16.msra.mxu1 %v2357_v59  ;;  %1660 = vmatprep.subr.bf16.mxu0 %v2358_v60  ;;  %v2438_v58 = vld [vmem:[#allocation5 + $0x584] ss:$16 sps:$4 sm:$0xff]   ;;  %v2436_v60 = vld [vmem:[#allocation5 + $0x580] ss:$16 sps:$4 sm:$0xff]  }
  0x5c   :  { %1701 = vmatprep.subr.bf16.mxu1 %v2360_v61  ;;  %v2441_v59 = vld [vmem:[#allocation5 + $0x784] ss:$16 sps:$4 sm:$0xff]   ;;  %v2439_v61 = vld [vmem:[#allocation5 + $0x780] ss:$16 sps:$4 sm:$0xff]  }
  0x5d   :  { %v2448_v4 = vld [vmem:[#allocation5 + $0x540] ss:$16 sps:$4 sm:$0xff]  }
  0x5e   :  { %1661 = vmatpush2.bf16.msra.mxu0 %v2362_v62  ;;  %v2444_v62 = vld [vmem:[#allocation5 + $0x564] ss:$16 sps:$4 sm:$0xff]   ;;  %v2451_v5 = vld [vmem:[#allocation5 + $0x740] ss:$16 sps:$4 sm:$0xff]  }
  0x5f   :  { %1702 = vmatpush2.bf16.msra.mxu1 %v2363_v63  ;;  %1662 = vmatprep.subr.bf16.mxu0 %v2364_v0  ;;  %v2447_v63 = vld [vmem:[#allocation5 + $0x764] ss:$16 sps:$4 sm:$0xff]   ;;  %v2442_v0 = vld [vmem:[#allocation5 + $0x560] ss:$16 sps:$4 sm:$0xff]  }
  0x60   :  { %1703 = vmatprep.subr.bf16.mxu1 %v2366_v1  ;;  %v2445_v1 = vld [vmem:[#allocation5 + $0x760] ss:$16 sps:$4 sm:$0xff]  }
  0x62   :  { %1663 = vmatpush2.bf16.msra.mxu0 %v2368_v2  ;;  %v2450_v2 = vld [vmem:[#allocation5 + $0x544] ss:$16 sps:$4 sm:$0xff]  }
  0x63   :  { %1704 = vmatpush2.bf16.msra.mxu1 %v2369_v3  ;;  %1714 = vmatprep.subr.bf16.mxu0 %v2372_v6  ;;  %v2453_v3 = vld [vmem:[#allocation5 + $0x744] ss:$16 sps:$4 sm:$0xff]  }
  0x64   :  { %1755 = vmatprep.subr.bf16.mxu1 %v2375_v7  ;;  %v2456_v6 = vld [vmem:[#allocation5 + $0x524] ss:$16 sps:$4 sm:$0xff]  }
  0x65   :  { %1665 = vmatmul.mubr.bf16.vlgmr.msra.gmra.mxu0 %v2776_v8  ;;  %v2459_v7 = vld [vmem:[#allocation5 + $0x724] ss:$16 sps:$4 sm:$0xff]  }
  0x66   :  { %1706 = vmatmul.mubr.bf16.vlgmr.msra.gmra.mxu1 %v2778_v9  ;;  %1715 = vmatpush1.bf16.msra.mxu0 %v2370_v10  ;;  %v2454_v10 = vld [vmem:[#allocation5 + $0x520] ss:$16 sps:$4 sm:$0xff]  }
  0x67   :  { %1756 = vmatpush1.bf16.msra.mxu1 %v2373_v11  ;;  %1716 = vmatprep.subr.bf16.mxu0 %v2378_v12  ;;  %v2457_v11 = vld [vmem:[#allocation5 + $0x720] ss:$16 sps:$4 sm:$0xff]   ;;  %v2462_v12 = vld [vmem:[#allocation5 + $0x504] ss:$16 sps:$4 sm:$0xff]  }
  0x68   :  { %1757 = vmatprep.subr.bf16.mxu1 %v2381_v13  ;;  %1746 = vmatprep.mubr.bf16.mxu0 %v2782_v37  ;;  %v2465_v13 = vld [vmem:[#allocation5 + $0x704] ss:$16 sps:$4 sm:$0xff]  }
  0x69   :  { %1787 = vmatprep.mubr.bf16.mxu1 %v2784_v40 }
  0x6a   :  { %1717 = vmatpush1.bf16.msra.mxu0 %v2376_v14  ;;  %v2460_v14 = vld [vmem:[#allocation5 + $0x500] ss:$16 sps:$4 sm:$0xff]  }
  0x6b   :  { %1758 = vmatpush1.bf16.msra.mxu1 %v2379_v15  ;;  %1718 = vmatprep.subr.bf16.mxu0 %v2384_v16  ;;  %v2463_v15 = vld [vmem:[#allocation5 + $0x700] ss:$16 sps:$4 sm:$0xff]  }
  0x6c   :  { %1759 = vmatprep.subr.bf16.mxu1 %v2387_v17  ;;  %v62_v16 = vld [vmem:[#allocation3 + $0x20] sm:$0xff]  ;;  %v64_v17 = vld [vmem:[#allocation3 + $0x30] sm:$0xff] }
  0x6e   :  { %1719 = vmatpush1.bf16.msra.mxu0 %v2382_v18  ;;  %v2468_v18 = vld [vmem:[#allocation5 + $0xec] ss:$16 sps:$4 sm:$0xff]  }
  0x6f   :  { %1760 = vmatpush1.bf16.msra.mxu1 %v2385_v19  ;;  %1720 = vmatprep.subr.bf16.mxu0 %v2390_v20  ;;  %v2471_v19 = vld [vmem:[#allocation5 + $0x2ec] ss:$16 sps:$4 sm:$0xff]   ;;  %v2788_v20 = vpack.c.bf16 %v62_v16, %v62_v16 }
  0x70   :  { %1761 = vmatprep.subr.bf16.mxu1 %v2393_v21  ;;  %v2790_v21 = vpack.c.bf16 %v64_v17, %v64_v17  ;;  %v2552_v16 = vld [vmem:[#allocation5 + $0x12c] ss:$16 sps:$4 sm:$0xff]  }
  0x71   :  { %v2555_v17 = vld [vmem:[#allocation5 + $0x32c] ss:$16 sps:$4 sm:$0xff]  }
  0x72   :  { %1721 = vmatpush1.bf16.msra.mxu0 %v2388_v22  ;;  %v2466_v22 = vld [vmem:[#allocation5 + $0xe8] ss:$16 sps:$4 sm:$0xff]  }
  0x73   :  { %1762 = vmatpush1.bf16.msra.mxu1 %v2391_v23  ;;  %1722 = vmatprep.subr.bf16.mxu0 %v2396_v24  ;;  %v2469_v23 = vld [vmem:[#allocation5 + $0x2e8] ss:$16 sps:$4 sm:$0xff]   ;;  %v2474_v24 = vld [vmem:[#allocation5 + $0xcc] ss:$16 sps:$4 sm:$0xff]  }
  0x74   :  { %1763 = vmatprep.subr.bf16.mxu1 %v2399_v25  ;;  %v2477_v25 = vld [vmem:[#allocation5 + $0x2cc] ss:$16 sps:$4 sm:$0xff]  }
  0x76   :  { %1723 = vmatpush1.bf16.msra.mxu0 %v2394_v26  ;;  %v2472_v26 = vld [vmem:[#allocation5 + $0xc8] ss:$16 sps:$4 sm:$0xff]  }
  0x77   :  { %1764 = vmatpush1.bf16.msra.mxu1 %v2397_v27  ;;  %1724 = vmatprep.subr.bf16.mxu0 %v2402_v28  ;;  %v2475_v27 = vld [vmem:[#allocation5 + $0x2c8] ss:$16 sps:$4 sm:$0xff]   ;;  %v2480_v28 = vld [vmem:[#allocation5 + $0xac] ss:$16 sps:$4 sm:$0xff]  }
  0x78   :  { %1765 = vmatprep.subr.bf16.mxu1 %v2405_v29  ;;  %v2483_v29 = vld [vmem:[#allocation5 + $0x2ac] ss:$16 sps:$4 sm:$0xff]  }
  0x7a   :  { %1725 = vmatpush1.bf16.msra.mxu0 %v2400_v30  ;;  %v2478_v30 = vld [vmem:[#allocation5 + $0xa8] ss:$16 sps:$4 sm:$0xff]  }
  0x7b   :  { %1766 = vmatpush1.bf16.msra.mxu1 %v2403_v31  ;;  %1726 = vmatprep.subr.bf16.mxu0 %v2408_v32  ;;  %v2481_v31 = vld [vmem:[#allocation5 + $0x2a8] ss:$16 sps:$4 sm:$0xff]   ;;  %v2486_v32 = vld [vmem:[#allocation5 + $0x8c] ss:$16 sps:$4 sm:$0xff]  }
  0x7c   :  { %1767 = vmatprep.subr.bf16.mxu1 %v2411_v33  ;;  %v2489_v33 = vld [vmem:[#allocation5 + $0x28c] ss:$16 sps:$4 sm:$0xff]  }
  0x7e   :  { %1727 = vmatpush1.bf16.msra.mxu0 %v2406_v35  ;;  %v2487_v35 = vld [vmem:[#allocation5 + $0x288] ss:$16 sps:$4 sm:$0xff]  }
  0x7f   :  { %1768 = vmatpush1.bf16.msra.mxu1 %v2409_v36  ;;  %1728 = vmatprep.subr.bf16.mxu0 %v2414_v39  ;;  %v2492_v36 = vld [vmem:[#allocation5 + $0x6c] ss:$16 sps:$4 sm:$0xff]   ;;  %v2490_v39 = vld [vmem:[#allocation5 + $0x68] ss:$16 sps:$4 sm:$0xff]  }
  0x80   :  { %1769 = vmatprep.subr.bf16.mxu1 %v2417_v41  ;;  %v2501_v41 = vld [vmem:[#allocation5 + $0x24c] ss:$16 sps:$4 sm:$0xff]  }
  0x82   :  { %1729 = vmatpush1.bf16.msra.mxu0 %v2412_v42  ;;  %v2496_v42 = vld [vmem:[#allocation5 + $0x48] ss:$16 sps:$4 sm:$0xff]  }
  0x83   :  { %1770 = vmatpush1.bf16.msra.mxu1 %v2415_v43  ;;  %1730 = vmatprep.subr.bf16.mxu0 %v2420_v44  ;;  %v2499_v43 = vld [vmem:[#allocation5 + $0x248] ss:$16 sps:$4 sm:$0xff]   ;;  %v2504_v44 = vld [vmem:[#allocation5 + $0x2c] ss:$16 sps:$4 sm:$0xff]  }
  0x84   :  { %1771 = vmatprep.subr.bf16.mxu1 %v2423_v45  ;;  %v2507_v45 = vld [vmem:[#allocation5 + $0x22c] ss:$16 sps:$4 sm:$0xff]  }
  0x86   :  { %1731 = vmatpush2.bf16.msra.mxu0 %v2418_v46  ;;  %v2502_v46 = vld [vmem:[#allocation5 + $0x28] ss:$16 sps:$4 sm:$0xff]  }
  0x87   :  { %1772 = vmatpush2.bf16.msra.mxu1 %v2421_v47  ;;  %1732 = vmatprep.subr.bf16.mxu0 %v2426_v48  ;;  %v2505_v47 = vld [vmem:[#allocation5 + $0x228] ss:$16 sps:$4 sm:$0xff]   ;;  %v2510_v48 = vld [vmem:[#allocation5 + $0xc] ss:$16 sps:$4 sm:$0xff]  }
  0x88   :  { %1773 = vmatprep.subr.bf16.mxu1 %v2429_v50  ;;  %v2513_v50 = vld [vmem:[#allocation5 + $0x20c] ss:$16 sps:$4 sm:$0xff]  }
  0x8a   :  { %1733 = vmatpush2.bf16.msra.mxu0 %v2424_v51  ;;  %v2508_v51 = vld [vmem:[#allocation5 + $0x8] ss:$16 sps:$4 sm:$0xff]  }
  0x8b   :  { %1774 = vmatpush2.bf16.msra.mxu1 %v2427_v53  ;;  %1734 = vmatprep.subr.bf16.mxu0 %v2432_v54  ;;  %v2511_v53 = vld [vmem:[#allocation5 + $0x208] ss:$16 sps:$4 sm:$0xff]   ;;  %v2516_v54 = vld [vmem:[#allocation5 + $0x1ec] ss:$16 sps:$4 sm:$0xff]  }
  0x8c   :  { %1775 = vmatprep.subr.bf16.mxu1 %v2435_v55  ;;  %v2519_v55 = vld [vmem:[#allocation5 + $0x3ec] ss:$16 sps:$4 sm:$0xff]  }
  0x8e   :  { %1735 = vmatpush2.bf16.msra.mxu0 %v2430_v56  ;;  %v2514_v56 = vld [vmem:[#allocation5 + $0x1e8] ss:$16 sps:$4 sm:$0xff]  }
  0x8f   :  { %1776 = vmatpush2.bf16.msra.mxu1 %v2433_v57  ;;  %1736 = vmatprep.subr.bf16.mxu0 %v2438_v58  ;;  %v2517_v57 = vld [vmem:[#allocation5 + $0x3e8] ss:$16 sps:$4 sm:$0xff]   ;;  %v2522_v58 = vld [vmem:[#allocation5 + $0x1cc] ss:$16 sps:$4 sm:$0xff]  }
  0x90   :  { %1777 = vmatprep.subr.bf16.mxu1 %v2441_v59  ;;  %v2525_v59 = vld [vmem:[#allocation5 + $0x3cc] ss:$16 sps:$4 sm:$0xff]  }
  0x92   :  { %1737 = vmatpush2.bf16.msra.mxu0 %v2436_v60  ;;  %v2520_v60 = vld [vmem:[#allocation5 + $0x1c8] ss:$16 sps:$4 sm:$0xff]  }
  0x93   :  { %1778 = vmatpush2.bf16.msra.mxu1 %v2439_v61  ;;  %1738 = vmatprep.subr.bf16.mxu0 %v2444_v62  ;;  %v2523_v61 = vld [vmem:[#allocation5 + $0x3c8] ss:$16 sps:$4 sm:$0xff]   ;;  %v2528_v62 = vld [vmem:[#allocation5 + $0x1ac] ss:$16 sps:$4 sm:$0xff]  }
  0x94   :  { %1779 = vmatprep.subr.bf16.mxu1 %v2447_v63  ;;  %v2531_v63 = vld [vmem:[#allocation5 + $0x3ac] ss:$16 sps:$4 sm:$0xff]  }
  0x96   :  { %1739 = vmatpush2.bf16.msra.mxu0 %v2442_v0  ;;  %v2526_v0 = vld [vmem:[#allocation5 + $0x1a8] ss:$16 sps:$4 sm:$0xff]  }
  0x97   :  { %1780 = vmatpush2.bf16.msra.mxu1 %v2445_v1  ;;  %1740 = vmatprep.subr.bf16.mxu0 %v2450_v2  ;;  %v2529_v1 = vld [vmem:[#allocation5 + $0x3a8] ss:$16 sps:$4 sm:$0xff]   ;;  %v2534_v2 = vld [vmem:[#allocation5 + $0x18c] ss:$16 sps:$4 sm:$0xff]  }
  0x98   :  { %1781 = vmatprep.subr.bf16.mxu1 %v2453_v3  ;;  %v2537_v3 = vld [vmem:[#allocation5 + $0x38c] ss:$16 sps:$4 sm:$0xff]  }
  0x9a   :  { %1741 = vmatpush2.bf16.msra.mxu0 %v2448_v4  ;;  %v2532_v4 = vld [vmem:[#allocation5 + $0x188] ss:$16 sps:$4 sm:$0xff]  }
  0x9b   :  { %1782 = vmatpush2.bf16.msra.mxu1 %v2451_v5  ;;  %1742 = vmatprep.subr.bf16.mxu0 %v2456_v6  ;;  %v2535_v5 = vld [vmem:[#allocation5 + $0x388] ss:$16 sps:$4 sm:$0xff]   ;;  %v2540_v6 = vld [vmem:[#allocation5 + $0x16c] ss:$16 sps:$4 sm:$0xff]  }
  0x9c   :  { %1783 = vmatprep.subr.bf16.mxu1 %v2459_v7  ;;  %v2543_v7 = vld [vmem:[#allocation5 + $0x36c] ss:$16 sps:$4 sm:$0xff]  }
  0x9e   :  { %1743 = vmatpush2.bf16.msra.mxu0 %v2454_v10  ;;  %v2538_v10 = vld [vmem:[#allocation5 + $0x168] ss:$16 sps:$4 sm:$0xff]  }
  0x9f   :  { %1784 = vmatpush2.bf16.msra.mxu1 %v2457_v11  ;;  %1744 = vmatprep.subr.bf16.mxu0 %v2462_v12  ;;  %v2541_v11 = vld [vmem:[#allocation5 + $0x368] ss:$16 sps:$4 sm:$0xff]   ;;  %v2546_v12 = vld [vmem:[#allocation5 + $0x14c] ss:$16 sps:$4 sm:$0xff]  }
  0xa0   :  { %1785 = vmatprep.subr.bf16.mxu1 %v2465_v13  ;;  %v2549_v13 = vld [vmem:[#allocation5 + $0x34c] ss:$16 sps:$4 sm:$0xff]  }
  0xa2   :  { %1745 = vmatpush2.bf16.msra.mxu0 %v2460_v14  ;;  %v2544_v14 = vld [vmem:[#allocation5 + $0x148] ss:$16 sps:$4 sm:$0xff]  }
  0xa3   :  { %1786 = vmatpush2.bf16.msra.mxu1 %v2463_v15  ;;  %1796 = vmatprep.subr.bf16.mxu0 %v2468_v18  ;;  %v2547_v15 = vld [vmem:[#allocation5 + $0x348] ss:$16 sps:$4 sm:$0xff]  }
  0xa4   :  { %1837 = vmatprep.subr.bf16.mxu1 %v2471_v19  ;;  %v2550_v18 = vld [vmem:[#allocation5 + $0x128] ss:$16 sps:$4 sm:$0xff]  }
  0xa5   :  { %1747 = vmatmul.mubr.bf16.vlgmr.msra.gmra.mxu0 %v2788_v20  ;;  %v2553_v19 = vld [vmem:[#allocation5 + $0x328] ss:$16 sps:$4 sm:$0xff]  }
  0xa6   :  { %1788 = vmatmul.mubr.bf16.vlgmr.msra.gmra.mxu1 %v2790_v21  ;;  %1797 = vmatpush1.bf16.msra.mxu0 %v2466_v22  ;;  %v2558_v22 = vld [vmem:[#allocation5 + $0x10c] ss:$16 sps:$4 sm:$0xff]  }
  0xa7   :  { %1838 = vmatpush1.bf16.msra.mxu1 %v2469_v23  ;;  %1798 = vmatprep.subr.bf16.mxu0 %v2474_v24  ;;  %v2561_v23 = vld [vmem:[#allocation5 + $0x30c] ss:$16 sps:$4 sm:$0xff]   ;;  %v2556_v24 = vld [vmem:[#allocation5 + $0x108] ss:$16 sps:$4 sm:$0xff]  }
  0xa8   :  { %1839 = vmatprep.subr.bf16.mxu1 %v2477_v25  ;;  %1828 = vmatprep.mubr.bf16.mxu0 %v2770_v49  ;;  %v2493_v49 = vld [vmem:[#allocation5 + $0x268] ss:$16 sps:$4 sm:$0xff]  }
  0xa9   :  { %1869 = vmatprep.mubr.bf16.mxu1 %v2772_v52  ;;  %v2498_v52 = vld [vmem:[#allocation5 + $0x4c] ss:$16 sps:$4 sm:$0xff]   ;;  %v2559_v25 = vld [vmem:[#allocation5 + $0x308] ss:$16 sps:$4 sm:$0xff]  }
  0xaa   :  { %1799 = vmatpush1.bf16.msra.mxu0 %v2472_v26  ;;  %v2564_v26 = vld [vmem:[#allocation5 + $0x4ec] ss:$16 sps:$4 sm:$0xff]  }
  0xab   :  { %1840 = vmatpush1.bf16.msra.mxu1 %v2475_v27  ;;  %1800 = vmatprep.subr.bf16.mxu0 %v2480_v28  ;;  %v2567_v27 = vld [vmem:[#allocation5 + $0x6ec] ss:$16 sps:$4 sm:$0xff]   ;;  %v2562_v28 = vld [vmem:[#allocation5 + $0x4e8] ss:$16 sps:$4 sm:$0xff]  }
  0xac   :  { %1841 = vmatprep.subr.bf16.mxu1 %v2483_v29  ;;  %v2565_v29 = vld [vmem:[#allocation5 + $0x6e8] ss:$16 sps:$4 sm:$0xff]  }
  0xae   :  { %1801 = vmatpush1.bf16.msra.mxu0 %v2478_v30  ;;  %v2570_v30 = vld [vmem:[#allocation5 + $0x4cc] ss:$16 sps:$4 sm:$0xff]  }
  0xaf   :  { %1842 = vmatpush1.bf16.msra.mxu1 %v2481_v31  ;;  %1802 = vmatprep.subr.bf16.mxu0 %v2486_v32  ;;  %v2573_v31 = vld [vmem:[#allocation5 + $0x6cc] ss:$16 sps:$4 sm:$0xff]   ;;  %v2568_v32 = vld [vmem:[#allocation5 + $0x4c8] ss:$16 sps:$4 sm:$0xff]  }
  0xb0   :  { %1843 = vmatprep.subr.bf16.mxu1 %v2489_v33  ;;  %v2571_v33 = vld [vmem:[#allocation5 + $0x6c8] ss:$16 sps:$4 sm:$0xff]  }
  0xb2   :  { %1803 = vmatpush1.bf16.msra.mxu0 %v2484_v34  ;;  %v2576_v34 = vld [vmem:[#allocation5 + $0x4ac] ss:$16 sps:$4 sm:$0xff]  }
  0xb3   :  { %1844 = vmatpush1.bf16.msra.mxu1 %v2487_v35  ;;  %1804 = vmatprep.subr.bf16.mxu0 %v2492_v36  ;;  %v2579_v35 = vld [vmem:[#allocation5 + $0x6ac] ss:$16 sps:$4 sm:$0xff]   ;;  %v2574_v36 = vld [vmem:[#allocation5 + $0x4a8] ss:$16 sps:$4 sm:$0xff]  }
  0xb4   :  { %1845 = vmatprep.subr.bf16.mxu1 %v2495_v38  ;;  %v2577_v38 = vld [vmem:[#allocation5 + $0x6a8] ss:$16 sps:$4 sm:$0xff]  }
  0xb6   :  { %1805 = vmatpush1.bf16.msra.mxu0 %v2490_v39  ;;  %v2580_v39 = vld [vmem:[#allocation5 + $0x488] ss:$16 sps:$4 sm:$0xff]  }
  0xb7   :  { %1846 = vmatpush1.bf16.msra.mxu1 %v2493_v49  ;;  %1806 = vmatprep.subr.bf16.mxu0 %v2498_v52  ;;  %v2583_v49 = vld [vmem:[#allocation5 + $0x688] ss:$16 sps:$4 sm:$0xff]   ;;  %v2588_v52 = vld [vmem:[#allocation5 + $0x46c] ss:$16 sps:$4 sm:$0xff]  }
  0xb8   :  { %1847 = vmatprep.subr.bf16.mxu1 %v2501_v41  ;;  %v2591_v41 = vld [vmem:[#allocation5 + $0x66c] ss:$16 sps:$4 sm:$0xff]  }
  0xba   :  { %1807 = vmatpush1.bf16.msra.mxu0 %v2496_v42  ;;  %v2594_v42 = vld [vmem:[#allocation5 + $0x44c] ss:$16 sps:$4 sm:$0xff]  }
  0xbb   :  { %1848 = vmatpush1.bf16.msra.mxu1 %v2499_v43  ;;  %1808 = vmatprep.subr.bf16.mxu0 %v2504_v44  ;;  %v2597_v43 = vld [vmem:[#allocation5 + $0x64c] ss:$16 sps:$4 sm:$0xff]   ;;  %v2592_v44 = vld [vmem:[#allocation5 + $0x448] ss:$16 sps:$4 sm:$0xff]  }
  0xbc   :  { %1849 = vmatprep.subr.bf16.mxu1 %v2507_v45  ;;  %v2595_v45 = vld [vmem:[#allocation5 + $0x648] ss:$16 sps:$4 sm:$0xff]  }
  0xbe   :  { %1809 = vmatpush1.bf16.msra.mxu0 %v2502_v46  ;;  %v2600_v46 = vld [vmem:[#allocation5 + $0x42c] ss:$16 sps:$4 sm:$0xff]  }
  0xbf   :  { %1850 = vmatpush1.bf16.msra.mxu1 %v2505_v47  ;;  %1810 = vmatprep.subr.bf16.mxu0 %v2510_v48  ;;  %v2603_v47 = vld [vmem:[#allocation5 + $0x62c] ss:$16 sps:$4 sm:$0xff]   ;;  %v2598_v48 = vld [vmem:[#allocation5 + $0x428] ss:$16 sps:$4 sm:$0xff]  }
  0xc0   :  { %1851 = vmatprep.subr.bf16.mxu1 %v2513_v50  ;;  %v2601_v50 = vld [vmem:[#allocation5 + $0x628] ss:$16 sps:$4 sm:$0xff]  }
  0xc2   :  { %1811 = vmatpush1.bf16.msra.mxu0 %v2508_v51  ;;  %v2606_v51 = vld [vmem:[#allocation5 + $0x40c] ss:$16 sps:$4 sm:$0xff]  }
  0xc3   :  { %1852 = vmatpush1.bf16.msra.mxu1 %v2511_v53  ;;  %1812 = vmatprep.subr.bf16.mxu0 %v2516_v54  ;;  %v2609_v53 = vld [vmem:[#allocation5 + $0x60c] ss:$16 sps:$4 sm:$0xff]   ;;  %v2604_v54 = vld [vmem:[#allocation5 + $0x408] ss:$16 sps:$4 sm:$0xff]  }
  0xc4   :  { %1853 = vmatprep.subr.bf16.mxu1 %v2519_v55  ;;  %v2607_v55 = vld [vmem:[#allocation5 + $0x608] ss:$16 sps:$4 sm:$0xff]  }
  0xc6   :  { %1813 = vmatpush2.bf16.msra.mxu0 %v2514_v56  ;;  %v2612_v56 = vld [vmem:[#allocation5 + $0x5ec] ss:$16 sps:$4 sm:$0xff]  }
  0xc7   :  { %1854 = vmatpush2.bf16.msra.mxu1 %v2517_v57  ;;  %1814 = vmatprep.subr.bf16.mxu0 %v2522_v58  ;;  %v2615_v57 = vld [vmem:[#allocation5 + $0x7ec] ss:$16 sps:$4 sm:$0xff]   ;;  %v2610_v58 = vld [vmem:[#allocation5 + $0x5e8] ss:$16 sps:$4 sm:$0xff]  }
  0xc8   :  { %1855 = vmatprep.subr.bf16.mxu1 %v2525_v59  ;;  %v2613_v59 = vld [vmem:[#allocation5 + $0x7e8] ss:$16 sps:$4 sm:$0xff]  }
  0xca   :  { %1815 = vmatpush2.bf16.msra.mxu0 %v2520_v60  ;;  %v2618_v60 = vld [vmem:[#allocation5 + $0x5cc] ss:$16 sps:$4 sm:$0xff]  }
  0xcb   :  { %1856 = vmatpush2.bf16.msra.mxu1 %v2523_v61  ;;  %1816 = vmatprep.subr.bf16.mxu0 %v2528_v62  ;;  %v2621_v61 = vld [vmem:[#allocation5 + $0x7cc] ss:$16 sps:$4 sm:$0xff]   ;;  %v2616_v62 = vld [vmem:[#allocation5 + $0x5c8] ss:$16 sps:$4 sm:$0xff]  }
  0xcc   :  { %1857 = vmatprep.subr.bf16.mxu1 %v2531_v63  ;;  %v2619_v63 = vld [vmem:[#allocation5 + $0x7c8] ss:$16 sps:$4 sm:$0xff]  }
  0xce   :  { %1817 = vmatpush2.bf16.msra.mxu0 %v2526_v0  ;;  %v2624_v0 = vld [vmem:[#allocation5 + $0x5ac] ss:$16 sps:$4 sm:$0xff]  }
  0xcf   :  { %1858 = vmatpush2.bf16.msra.mxu1 %v2529_v1  ;;  %1818 = vmatprep.subr.bf16.mxu0 %v2534_v2  ;;  %v2627_v1 = vld [vmem:[#allocation5 + $0x7ac] ss:$16 sps:$4 sm:$0xff]   ;;  %v2622_v2 = vld [vmem:[#allocation5 + $0x5a8] ss:$16 sps:$4 sm:$0xff]  }
  0xd0   :  { %1859 = vmatprep.subr.bf16.mxu1 %v2537_v3  ;;  %v2625_v3 = vld [vmem:[#allocation5 + $0x7a8] ss:$16 sps:$4 sm:$0xff]  }
  0xd2   :  { %1819 = vmatpush2.bf16.msra.mxu0 %v2532_v4  ;;  %v2630_v4 = vld [vmem:[#allocation5 + $0x58c] ss:$16 sps:$4 sm:$0xff]  }
  0xd3   :  { %1860 = vmatpush2.bf16.msra.mxu1 %v2535_v5  ;;  %1820 = vmatprep.subr.bf16.mxu0 %v2540_v6  ;;  %v2633_v5 = vld [vmem:[#allocation5 + $0x78c] ss:$16 sps:$4 sm:$0xff]   ;;  %v2628_v6 = vld [vmem:[#allocation5 + $0x588] ss:$16 sps:$4 sm:$0xff]  }
  0xd4   :  { %1861 = vmatprep.subr.bf16.mxu1 %v2543_v7  ;;  %v2631_v7 = vld [vmem:[#allocation5 + $0x788] ss:$16 sps:$4 sm:$0xff]  }
  0xd6   :  { %1821 = vmatpush2.bf16.msra.mxu0 %v2538_v10  ;;  %v2636_v10 = vld [vmem:[#allocation5 + $0x56c] ss:$16 sps:$4 sm:$0xff]  }
  0xd7   :  { %1862 = vmatpush2.bf16.msra.mxu1 %v2541_v11  ;;  %1822 = vmatprep.subr.bf16.mxu0 %v2546_v12  ;;  %v2639_v11 = vld [vmem:[#allocation5 + $0x76c] ss:$16 sps:$4 sm:$0xff]   ;;  %v2634_v12 = vld [vmem:[#allocation5 + $0x568] ss:$16 sps:$4 sm:$0xff]  }
  0xd8   :  { %1863 = vmatprep.subr.bf16.mxu1 %v2549_v13  ;;  %v2637_v13 = vld [vmem:[#allocation5 + $0x768] ss:$16 sps:$4 sm:$0xff]  }
  0xda   :  { %1823 = vmatpush2.bf16.msra.mxu0 %v2544_v14  ;;  %v2642_v14 = vld [vmem:[#allocation5 + $0x54c] ss:$16 sps:$4 sm:$0xff]  }
  0xdb   :  { %1864 = vmatpush2.bf16.msra.mxu1 %v2547_v15  ;;  %1824 = vmatprep.subr.bf16.mxu0 %v2552_v16  ;;  %v2645_v15 = vld [vmem:[#allocation5 + $0x74c] ss:$16 sps:$4 sm:$0xff]   ;;  %v2640_v16 = vld [vmem:[#allocation5 + $0x548] ss:$16 sps:$4 sm:$0xff]  }
  0xdc   :  { %1865 = vmatprep.subr.bf16.mxu1 %v2555_v17  ;;  %v2643_v17 = vld [vmem:[#allocation5 + $0x748] ss:$16 sps:$4 sm:$0xff]  }
  0xde   :  { %1825 = vmatpush2.bf16.msra.mxu0 %v2550_v18  ;;  %v332_v18 = vlaneseq }
  0xdf   :  { %1866 = vmatpush2.bf16.msra.mxu1 %v2553_v19  ;;  %1826 = vmatprep.subr.bf16.mxu0 %v2558_v22  ;;  %v2648_v19 = vld [vmem:[#allocation5 + $0x52c] ss:$16 sps:$4 sm:$0xff]  }
  0xe0   :  { %1867 = vmatprep.subr.bf16.mxu1 %v2561_v23  ;;  %v2651_v22 = vld [vmem:[#allocation5 + $0x72c] ss:$16 sps:$4 sm:$0xff]   ;;  %v2646_v23 = vld [vmem:[#allocation5 + $0x528] ss:$16 sps:$4 sm:$0xff]  }
  0xe2   :  { %1827 = vmatpush2.bf16.msra.mxu0 %v2556_v24  ;;  %v2649_v24 = vld [vmem:[#allocation5 + $0x728] ss:$16 sps:$4 sm:$0xff]  }
  0xe3   :  { %1868 = vmatpush2.bf16.msra.mxu1 %v2559_v25  ;;  %1878 = vmatprep.subr.bf16.mxu0 %v2564_v26  ;;  %v2800_v25 = vshrl.u32 %v332_v18, 7  ;;  %v2654_v26 = vld [vmem:[#allocation5 + $0x50c] ss:$16 sps:$4 sm:$0xff]  }
  0xe4   :  { %1919 = vmatprep.subr.bf16.mxu1 %v2567_v27  ;;  %v2657_v27 = vld [vmem:[#allocation5 + $0x70c] ss:$16 sps:$4 sm:$0xff]  }
  0xe5   :  { %1829 = vmatmul.mubr.bf16.vlgmr.msra.gmra.mxu0 %v2776_v8  ;;  %v2582_v8 = vld [vmem:[#allocation5 + $0x48c] ss:$16 sps:$4 sm:$0xff]  }
  0xe6   :  { %1870 = vmatmul.mubr.bf16.vlgmr.msra.gmra.mxu1 %v2778_v9  ;;  %1879 = vmatpush1.bf16.msra.mxu0 %v2562_v28  ;;  %v2585_v9 = vld [vmem:[#allocation5 + $0x68c] ss:$16 sps:$4 sm:$0xff]   ;;  %v2652_v28 = vld [vmem:[#allocation5 + $0x508] ss:$16 sps:$4 sm:$0xff]  }
  0xe7   :  { %1920 = vmatpush1.bf16.msra.mxu1 %v2565_v29  ;;  %1880 = vmatprep.subr.bf16.mxu0 %v2570_v30  ;;  %v2655_v29 = vld [vmem:[#allocation5 + $0x708] ss:$16 sps:$4 sm:$0xff]   ;;  %v334_v30 = vsub.s32 0, %v2800_v25 }
  0xe8   :  { %1921 = vmatprep.subr.bf16.mxu1 %v2573_v31  ;;  %1910 = vmatprep.mubr.bf16.mxu0 %v2782_v37  ;;  %v2586_v37 = vld [vmem:[#allocation5 + $0x468] ss:$16 sps:$4 sm:$0xff]   ;;  %v330_v31 = vld [vmem:[%s2819_s2] sm:$0xf] }
  0xe9   :  { %1951 = vmatprep.mubr.bf16.mxu1 %v2784_v40  ;;  %v2589_v40 = vld [vmem:[#allocation5 + $0x668] ss:$16 sps:$4 sm:$0xff]  }
  0xea   :  { %1881 = vmatpush1.bf16.msra.mxu0 %v2568_v32  ;;  %v338_v32 = vsub.s32 1, %v2800_v25 }
  0xeb   :  { %1922 = vmatpush1.bf16.msra.mxu1 %v2571_v33  ;;  %1882 = vmatprep.subr.bf16.mxu0 %v2576_v34  ;;  %v335_v33 = vrot.slane %v330_v31, %v334_v30 }
  0xec   :  { %1923 = vmatprep.subr.bf16.mxu1 %v2579_v35  ;;  %v339_v34 = vrot.slane %v330_v31, %v338_v32 }
  0xee   :  { %1883 = vmatpush1.bf16.msra.mxu0 %v2574_v36 }
  0xef   :  { %1924 = vmatpush1.bf16.msra.mxu1 %v2577_v38  ;;  %1884 = vmatprep.subr.bf16.mxu0 %v2582_v8 }
  0xf0   :  { %1925 = vmatprep.subr.bf16.mxu1 %v2585_v9 }
  0xf2   :  { %1885 = vmatpush1.bf16.msra.mxu0 %v2580_v39 }
  0xf3   :  { %1926 = vmatpush1.bf16.msra.mxu1 %v2583_v49  ;;  %1886 = vmatprep.subr.bf16.mxu0 %v2588_v52 }
  0xf4   :  { %1927 = vmatprep.subr.bf16.mxu1 %v2591_v41 }
  0xf6   :  { %1887 = vmatpush1.bf16.msra.mxu0 %v2586_v37 }
  0xf7   :  { %1928 = vmatpush1.bf16.msra.mxu1 %v2589_v40  ;;  %1888 = vmatprep.subr.bf16.mxu0 %v2594_v42 }
  0xf8   :  { %1929 = vmatprep.subr.bf16.mxu1 %v2597_v43 }
  0xfa   :  { %1889 = vmatpush1.bf16.msra.mxu0 %v2592_v44 }
  0xfb   :  { %1930 = vmatpush1.bf16.msra.mxu1 %v2595_v45  ;;  %1890 = vmatprep.subr.bf16.mxu0 %v2600_v46  ;;  %v1964_v46 = vld [vmem:[#allocation7] sm:$0xf] }
  0xfc   :  { %1931 = vmatprep.subr.bf16.mxu1 %v2603_v47 }
  0xfe   :  { %1891 = vmatpush1.bf16.msra.mxu0 %v2598_v48 }
  0xff   :  { %1932 = vmatpush1.bf16.msra.mxu1 %v2601_v50  ;;  %1892 = vmatprep.subr.bf16.mxu0 %v2606_v51 }
 0x100   :  { %1933 = vmatprep.subr.bf16.mxu1 %v2609_v53 }
 0x102   :  { %1893 = vmatpush1.bf16.msra.mxu0 %v2604_v54  ;;  %v1969_v54 = vrot.slane %v1964_v46, %v334_v30 }
 0x103   :  { %1934 = vmatpush1.bf16.msra.mxu1 %v2607_v55  ;;  %1894 = vmatprep.subr.bf16.mxu0 %v2612_v56  ;;  %v1973_v56 = vrot.slane %v1964_v46, %v338_v32 }
 0x104   :  { %1935 = vmatprep.subr.bf16.mxu1 %v2615_v57 }
 0x106   :  { %1895 = vmatpush2.bf16.msra.mxu0 %v2610_v58 }
 0x107   :  { %1936 = vmatpush2.bf16.msra.mxu1 %v2613_v59  ;;  %1896 = vmatprep.subr.bf16.mxu0 %v2618_v60 }
 0x108   :  { %1937 = vmatprep.subr.bf16.mxu1 %v2621_v61 }
 0x10a   :  { %1897 = vmatpush2.bf16.msra.mxu0 %v2616_v62 }
 0x10b   :  { %1938 = vmatpush2.bf16.msra.mxu1 %v2619_v63  ;;  %1898 = vmatprep.subr.bf16.mxu0 %v2624_v0 }
 0x10c   :  { %1939 = vmatprep.subr.bf16.mxu1 %v2627_v1 }
 0x10e   :  { %1899 = vmatpush2.bf16.msra.mxu0 %v2622_v2 }
 0x10f   :  { %1940 = vmatpush2.bf16.msra.mxu1 %v2625_v3  ;;  %1900 = vmatprep.subr.bf16.mxu0 %v2630_v4 }
 0x110   :  { %1941 = vmatprep.subr.bf16.mxu1 %v2633_v5 }
 0x112   :  { %1901 = vmatpush2.bf16.msra.mxu0 %v2628_v6 }
 0x113   :  { %1942 = vmatpush2.bf16.msra.mxu1 %v2631_v7  ;;  %1902 = vmatprep.subr.bf16.mxu0 %v2636_v10  ;;  %v342_v7 = vsub.s32 2, %v2800_v25  ;;  %v346_v10 = vsub.s32 3, %v2800_v25 }
 0x114   :  { %1943 = vmatprep.subr.bf16.mxu1 %v2639_v11 }
 0x115   :  { %v343_v11 = vrot.slane %v330_v31, %v342_v7 }
 0x116   :  { %1903 = vmatpush2.bf16.msra.mxu0 %v2634_v12  ;;  %v347_v12 = vrot.slane %v330_v31, %v346_v10 }
 0x117   :  { %1944 = vmatpush2.bf16.msra.mxu1 %v2637_v13  ;;  %1904 = vmatprep.subr.bf16.mxu0 %v2642_v14 }
 0x118   :  { %1945 = vmatprep.subr.bf16.mxu1 %v2645_v15 }
 0x11a   :  { %1905 = vmatpush2.bf16.msra.mxu0 %v2640_v16 }
 0x11b   :  { %1946 = vmatpush2.bf16.msra.mxu1 %v2643_v17  ;;  %1906 = vmatprep.subr.bf16.mxu0 %v2648_v19 }
 0x11c   :  { %1947 = vmatprep.subr.bf16.mxu1 %v2651_v22 }
 0x11e   :  { %1907 = vmatpush2.bf16.msra.mxu0 %v2646_v23 }
 0x11f   :  { %1948 = vmatpush2.bf16.msra.mxu1 %v2649_v24  ;;  %1908 = vmatprep.subr.bf16.mxu0 %v2654_v26  ;;  %v1977_v26 = vrot.slane %v1964_v46, %v342_v7 }
 0x120   :  { %1949 = vmatprep.subr.bf16.mxu1 %v2657_v27 }
 0x122   :  { %1909 = vmatpush2.bf16.msra.mxu0 %v2652_v28 }
 0x123   :  { %1950 = vmatpush2.bf16.msra.mxu1 %v2655_v29 }
 0x125   :  { %v1666_v35 = vpop.f32.mrf.mxu0  ;;  %1911 = vmatmul.mubr.bf16.vlgmr.msra.gmra.mxu0 %v2788_v20 }
 0x126   :  { %v1707_v36 = vpop.f32.mrf.mxu1  ;;  %1952 = vmatmul.mubr.bf16.vlgmr.msra.gmra.mxu1 %v2790_v21  ;;  %v1667_v38 = vadd.f32 %v1666_v35, %v335_v33  ;;  %v1981_v33 = vrot.slane %v1964_v46, %v346_v10 }
 0x127   :  { %v1668_v8 = vpop.f32.mrf.mxu0 }
 0x128   :  { %v1709_v9 = vpop.f32.mrf.mxu1  ;;  %v1708_v39 = vadd.f32 %v1707_v36, %v1667_v38  ;;  %v1669_v49 = vadd.f32 %v1668_v8, %v339_v34 }
 0x129   :  { %v1670_v52 = vpop.f32.mrf.mxu0 }
 0x12a   :  { %v1711_v41 = vpop.f32.mrf.mxu1  ;;  %v1710_v37 = vadd.f32 %v1709_v9, %v1669_v49  ;;  %v1996_v9 = vstv %s2821_s4 }
 0x12b   :  { %v1671_v40 = vpop.f32.mrf.mxu0 }
 0x12c   :  { %v1712_v42 = vpop.f32.mrf.mxu1 }
 0x165   :  { %v1748_v43 = vpop.f32.mrf.mxu0 }
 0x166   :  { %v1789_v44 = vpop.f32.mrf.mxu1  ;;  %v1749_v45 = vadd.f32 %v1748_v43, %v1708_v39 }
 0x167   :  { %v1750_v47 = vpop.f32.mrf.mxu0 }
 0x168   :  { %v1791_v48 = vpop.f32.mrf.mxu1  ;;  %v1790_v50 = vadd.f32 %v1789_v44, %v1749_v45  ;;  %v1751_v20 = vadd.f32 %v1750_v47, %v1710_v37 }
 0x169   :  { %v1752_v51 = vpop.f32.mrf.mxu0 }
 0x16a   :  { %v1793_v21 = vpop.f32.mrf.mxu1  ;;  %v1960_v53 = vmax.f32 %v1790_v50, 0.0  ;;  %v1792_v55 = vadd.f32 %v1791_v48, %v1751_v20 }
 0x16b   :  { %v1753_v57 = vpop.f32.mrf.mxu0 }
 0x16c   :  { %v1794_v58 = vpop.f32.mrf.mxu1  ;;  %v1961_v59 = vmax.f32 %v1792_v55, 0.0  ;;  %v1986_v60 = vmul.f32 %v1969_v54, %v1960_v53 }
 0x16e   :  { %v1987_v61 = vmul.f32 %v1973_v56, %v1961_v59 }
 0x170   :  { %v1990_v62 = vadd.f32 %v1987_v61, %v1986_v60 }
 0x1a5   :  { %v1830_v63 = vpop.f32.mrf.mxu0 }
 0x1a6   :  { %v1871_v0 = vpop.f32.mrf.mxu1  ;;  %v1831_v13 = vadd.f32 %v1830_v63, %v343_v11 }
 0x1a7   :  { %v1832_v1 = vpop.f32.mrf.mxu0 }
 0x1a8   :  { %v1873_v2 = vpop.f32.mrf.mxu1  ;;  %v1833_v14 = vadd.f32 %v1832_v1, %v347_v12  ;;  %v1872_v15 = vadd.f32 %v1871_v0, %v1831_v13 }
 0x1a9   :  { %v1834_v3 = vpop.f32.mrf.mxu0 }
 0x1aa   :  { %v1875_v4 = vpop.f32.mrf.mxu1  ;;  %v1874_v18 = vadd.f32 %v1873_v2, %v1833_v14 }
 0x1ab   :  { %v1835_v5 = vpop.f32.mrf.mxu0 }
 0x1ac   :  { %v1876_v6 = vpop.f32.mrf.mxu1 }
 0x1e5   :  { %v1912_v16 = vpop.f32.mrf.mxu0 }
 0x1e6   :  { %v1953_v17 = vpop.f32.mrf.mxu1  ;;  %v1913_v19 = vadd.f32 %v1912_v16, %v1872_v15 }
 0x1e7   :  { %v1914_v22 = vpop.f32.mrf.mxu0 }
 0x1e8   :  { %v1955_v23 = vpop.f32.mrf.mxu1  ;;  %v1954_v24 = vadd.f32 %v1953_v17, %v1913_v19  ;;  %v1915_v27 = vadd.f32 %v1914_v22, %v1874_v18 }
 0x1e9   :  { %v1916_v28 = vpop.f32.mrf.mxu0 }
 0x1ea   :  { %v1957_v29 = vpop.f32.mrf.mxu1  ;;  %v1962_v30 = vmax.f32 %v1954_v24, 0.0  ;;  %v1956_v32 = vadd.f32 %v1955_v23, %v1915_v27 }
 0x1eb   :  { %v1917_v25 = vpop.f32.mrf.mxu0 }
 0x1ec   :  { %v1958_v34 = vpop.f32.mrf.mxu1  ;;  %v1988_v31 = vmul.f32 %v1977_v26, %v1962_v30  ;;  %v1963_v35 = vmax.f32 %v1956_v32, 0.0 }
 0x1ee   :  { %v1989_v36 = vmul.f32 %v1981_v33, %v1963_v35  ;;  %v1991_v38 = vadd.f32 %v1990_v62, %v1988_v31 }
 0x1f0   :  { %v1992_v8 = vadd.f32 %v1991_v38, %v1989_v36 }
 0x1f2   :  { %1993 = vadd.xlane.f32.xlu0 %v1992_v8 }
 0x27b   :  { %v1994_v39 = vpop.xlane.xlu0 %1993 }
 0x27c   :  { %v1997_v49 = vadd.f32 %v1996_v9, %v1994_v39 }
 0x27e   :  { %v2268_v52 = vmul.f32 -1.442695, %v1997_v49 }
 0x280   :  { %2658 = vpow2.f32 %v2268_v52 }
 0x28d   :  { %v2659_v41 = vpop.eup %2658 }
 0x28e   :  { %v2001_v37 = vadd.f32 1.0, %v2659_v41 }
 0x290   :  { %2660 = vrcp.f32 %v2001_v37 }
 0x29d   :  { %v2661_v40 = vpop.eup %2660 }
 0x29e   :  { %2005 = vst.msk [vmem:[%s2822_s5] sm:$0xff] %vm2004_vm0, %v2661_v40 }
 0x29f   :  { %2010 = vsyncpa [#allocation4], 1 }
 0x2a0   :  { %2011 = vsyncpa [#allocation6], 1 }

// kernel: tpu_custom_call.1
= control target key start
LH: loop header
LB: loop body
LE: loop exit
PB: predicated region body
PF: predicated region fallthrough
CT: control target
= control target key end

     0   :  { %11 = vsyncpa [#allocation4], 0  ;;  %s2817_s0 = inlined_call_operand.hbm [shape: f32[8,1024], index: 0, kind: input, shape index: {}]   ;;  %s2818_s1 = inlined_call_operand.hbm [shape: bf16[1024,512], index: 1, kind: input, shape index: {}]   ;;  %s2819_s2 = inlined_call_operand.vmem [shape: f32[1,512], index: 2, kind: input, shape index: {}]   ;;  %s2820_s3 = inlined_call_operand.hbm [shape: f32[1,512], index: 3, kind: input, shape index: {}]   ;;  %s2821_s4 = inlined_call_operand.<no memory space> [shape: f32[1,1], index: 4, kind: input, shape index: {}]   ;;  %s2822_s5 = inlined_call_operand.vmem [shape: f32[8,1], index: 5, kind: output, shape index: {}]  }
   0x1   :  { %12 = vsyncpa [#allocation6], 0  ;;  %s2726_s18 = smov [#allocation5]  }
   0x2   :  { %s28_s19 = sshll.u32 %s2726_s18, 4  ;;  %s29_s19 = int_to_ptr.vmem [resolvable:$true] %s28_s19 }
   0x3   :  { %s2670_s20 = scalar_lea.vmem %s29_s19, 32768  ;;  %p2675_p1 = scmp.lt.s32.totalorder %s29_s19, %s29_s19 }
   0x4   :  { %p2671_p0 = scmp.ne.s32.totalorder %s29_s19, %s2670_s20  ;;  %p2676_p2 = scmp.lt.s32.totalorder %s2670_s20, %s2670_s20 }
   0x6   :  { %p2677_p3 = por %p2676_p2, %p2675_p1 }
   0x8   :  { %p2678_p4 = pnand %p2677_p3, %p2671_p0 }
   0xa   :  { %2681 = shalt.err (!%p2678_p4)
}
   0xb   :  { %s2727_s21 = smov 256   ;;  %s2728_s22 = smov 16  }
   0xc   :  { %34 = dma.hbm_to_vmem [thread:$0]  %s2818_s1, 32768, %s29_s19, [#allocation6], %s2727_s21, %s2727_s21, %s2728_s22  }
   0xd   :  { %s2729_s25 = smov [#allocation3]   ;;  %s2730_s27 = smov [#allocation7]  }
   0xe   :  { %s19_s26 = sshll.u32 %s2729_s25, 4  ;;  %s43_s28 = sshll.u32 %s2730_s27, 4  ;;  %s20_s26 = int_to_ptr.vmem [resolvable:$true] %s19_s26  ;;  %s44_s28 = int_to_ptr.vmem [resolvable:$true] %s43_s28 }
   0xf   :  { %s2690_s29 = scalar_lea.vmem %s20_s26, 1024  ;;  %p2695_p6 = scmp.lt.s32.totalorder %s20_s26, %s20_s26 }
  0x10   :  { %p2691_p5 = scmp.ne.s32.totalorder %s20_s26, %s2690_s29  ;;  %p2696_p7 = scmp.lt.s32.totalorder %s2690_s29, %s2690_s29 }
  0x12   :  { %p2697_p8 = por %p2696_p7, %p2695_p6 }
  0x14   :  { %p2698_p9 = pnand %p2697_p8, %p2691_p5 }
  0x16   :  { %2701 = shalt.err (!%p2698_p9)
}
  0x17   :  { %22 = dma.hbm_to_vmem [thread:$0]  %s2817_s0, 1024, %s20_s26, [#allocation4]  }
  0x18   :  { %s2710_s7 = scalar_lea.vmem %s44_s28, 64  ;;  %p2715_p11 = scmp.lt.s32.totalorder %s44_s28, %s44_s28 }
  0x19   :  { %p2711_p10 = scmp.ne.s32.totalorder %s44_s28, %s2710_s7  ;;  %p2716_p12 = scmp.lt.s32.totalorder %s2710_s7, %s2710_s7 }
  0x1b   :  { %p2717_p13 = por %p2716_p12, %p2715_p11 }
  0x1d   :  { %p2718_p0 = pnand %p2717_p13, %p2711_p10 }
  0x1f   :  { %2721 = shalt.err (!%p2718_p0)
}
  0x20   :  { %46 = dma.hbm_to_vmem [thread:$0]  %s2820_s3, 64, %s44_s28, [#allocation6]  }
  0x21   :  { %2722 = dma.done.wait [#allocation4], 1024  }
  0x22   :  { %2723 = vsyncadd [#allocation4], 4294966272 }
  0x23   :  { %2724 = dma.done.wait [#allocation6], 32832  }
  0x24   :  { %2725 = vsyncadd [#allocation6], 4294934464  ;;  %v2274_v0 = vld [vmem:[#allocation5 + $0xe4] ss:$16 sps:$4 sm:$0xff]   ;;  %v2278_v2 = vld [vmem:[#allocation5 + $0xe0] ss:$16 sps:$4 sm:$0xff]  }
  0x25   :  { %v2276_v1 = vld [vmem:[#allocation5 + $0x2e4] ss:$16 sps:$4 sm:$0xff]   ;;  %1632 = vmatprep.subr.bf16.mxu0 %v2274_v0  ;;  %v2279_v3 = vld [vmem:[#allocation5 + $0x2e0] ss:$16 sps:$4 sm:$0xff]   ;;  %v59_v46 = vld [vmem:[#allocation3 + $0x8] sm:$0xff]  ;;  %vm2004_vm0 = vcmask 7168  }
  0x26   :  { %1673 = vmatprep.subr.bf16.mxu1 %v2276_v1  ;;  %v2280_v4 = vld [vmem:[#allocation5 + $0xc4] ss:$16 sps:$4 sm:$0xff]   ;;  %1633 = vmatpush1.bf16.msra.mxu0 %v2278_v2  ;;  %v2284_v6 = vld [vmem:[#allocation5 + $0xc0] ss:$16 sps:$4 sm:$0xff]   ;;  %v2770_v49 = vpack.c.bf16 %v59_v46, %v59_v46  ;;  %v61_v50 = vld [vmem:[#allocation3 + $0x18] sm:$0xff] }
  0x27   :  { %1674 = vmatpush1.bf16.msra.mxu1 %v2279_v3  ;;  %v2282_v5 = vld [vmem:[#allocation5 + $0x2c4] ss:$16 sps:$4 sm:$0xff]   ;;  %1634 = vmatprep.subr.bf16.mxu0 %v2280_v4  ;;  %v2285_v7 = vld [vmem:[#allocation5 + $0x2c0] ss:$16 sps:$4 sm:$0xff]   ;;  %v2772_v52 = vpack.c.bf16 %v61_v50, %v61_v50 }
  0x28   :  { %1675 = vmatprep.subr.bf16.mxu1 %v2282_v5  ;;  %v2286_v8 = vld [vmem:[#allocation5 + $0xa4] ss:$16 sps:$4 sm:$0xff]   ;;  %v2290_v10 = vld [vmem:[#allocation5 + $0xa0] ss:$16 sps:$4 sm:$0xff]   ;;  %1664 = vmatprep.mubr.bf16.mxu0 %v2770_v49 }
  0x29   :  { %v2288_v9 = vld [vmem:[#allocation5 + $0x2a4] ss:$16 sps:$4 sm:$0xff]   ;;  %v2291_v11 = vld [vmem:[#allocation5 + $0x2a0] ss:$16 sps:$4 sm:$0xff]   ;;  %1705 = vmatprep.mubr.bf16.mxu1 %v2772_v52 }
  0x2a   :  { %1635 = vmatpush1.bf16.msra.mxu0 %v2284_v6  ;;  %v2292_v12 = vld [vmem:[#allocation5 + $0x84] ss:$16 sps:$4 sm:$0xff]   ;;  %v2296_v14 = vld [vmem:[#allocation5 + $0x80] ss:$16 sps:$4 sm:$0xff]  }
  0x2b   :  { %1676 = vmatpush1.bf16.msra.mxu1 %v2285_v7  ;;  %1636 = vmatprep.subr.bf16.mxu0 %v2286_v8  ;;  %v2294_v13 = vld [vmem:[#allocation5 + $0x284] ss:$16 sps:$4 sm:$0xff]   ;;  %v2297_v15 = vld [vmem:[#allocation5 + $0x280] ss:$16 sps:$4 sm:$0xff]  }
  0x2c   :  { %1677 = vmatprep.subr.bf16.mxu1 %v2288_v9  ;;  %v2298_v16 = vld [vmem:[#allocation5 + $0x64] ss:$16 sps:$4 sm:$0xff]   ;;  %v2302_v18 = vld [vmem:[#allocation5 + $0x60] ss:$16 sps:$4 sm:$0xff]  }
  0x2d   :  { %v2300_v17 = vld [vmem:[#allocation5 + $0x264] ss:$16 sps:$4 sm:$0xff]   ;;  %v2303_v19 = vld [vmem:[#allocation5 + $0x260] ss:$16 sps:$4 sm:$0xff]  }
  0x2e   :  { %1637 = vmatpush1.bf16.msra.mxu0 %v2290_v10  ;;  %v2304_v20 = vld [vmem:[#allocation5 + $0x44] ss:$16 sps:$4 sm:$0xff]   ;;  %v2308_v22 = vld [vmem:[#allocation5 + $0x40] ss:$16 sps:$4 sm:$0xff]  }
  0x2f   :  { %1678 = vmatpush1.bf16.msra.mxu1 %v2291_v11  ;;  %1638 = vmatprep.subr.bf16.mxu0 %v2292_v12  ;;  %v2306_v21 = vld [vmem:[#allocation5 + $0x244] ss:$16 sps:$4 sm:$0xff]   ;;  %v2309_v23 = vld [vmem:[#allocation5 + $0x240] ss:$16 sps:$4 sm:$0xff]  }
  0x30   :  { %1679 = vmatprep.subr.bf16.mxu1 %v2294_v13  ;;  %v2310_v24 = vld [vmem:[#allocation5 + $0x24] ss:$16 sps:$4 sm:$0xff]   ;;  %v2314_v26 = vld [vmem:[#allocation5 + $0x20] ss:$16 sps:$4 sm:$0xff]  }
  0x31   :  { %v2312_v25 = vld [vmem:[#allocation5 + $0x224] ss:$16 sps:$4 sm:$0xff]   ;;  %v2315_v27 = vld [vmem:[#allocation5 + $0x220] ss:$16 sps:$4 sm:$0xff]  }
  0x32   :  { %1639 = vmatpush1.bf16.msra.mxu0 %v2296_v14  ;;  %v2316_v28 = vld [vmem:[#allocation5 + $0x4] ss:$16 sps:$4 sm:$0xff]   ;;  %v2320_v30 = vld [vmem:[#allocation5] ss:$16 sps:$4 sm:$0xff]  }
  0x33   :  { %1680 = vmatpush1.bf16.msra.mxu1 %v2297_v15  ;;  %1640 = vmatprep.subr.bf16.mxu0 %v2298_v16  ;;  %v2318_v29 = vld [vmem:[#allocation5 + $0x204] ss:$16 sps:$4 sm:$0xff]   ;;  %v2321_v31 = vld [vmem:[#allocation5 + $0x200] ss:$16 sps:$4 sm:$0xff]  }
  0x34   :  { %1681 = vmatprep.subr.bf16.mxu1 %v2300_v17  ;;  %v2322_v32 = vld [vmem:[#allocation5 + $0x1e4] ss:$16 sps:$4 sm:$0xff]   ;;  %v2326_v34 = vld [vmem:[#allocation5 + $0x1e0] ss:$16 sps:$4 sm:$0xff]  }
  0x35   :  { %v2324_v33 = vld [vmem:[#allocation5 + $0x3e4] ss:$16 sps:$4 sm:$0xff]   ;;  %v2327_v35 = vld [vmem:[#allocation5 + $0x3e0] ss:$16 sps:$4 sm:$0xff]  }
  0x36   :  { %1641 = vmatpush1.bf16.msra.mxu0 %v2302_v18  ;;  %v2328_v36 = vld [vmem:[#allocation5 + $0x1c4] ss:$16 sps:$4 sm:$0xff]   ;;  %v2332_v38 = vld [vmem:[#allocation5 + $0x1c0] ss:$16 sps:$4 sm:$0xff]  }
  0x37   :  { %1682 = vmatpush1.bf16.msra.mxu1 %v2303_v19  ;;  %1642 = vmatprep.subr.bf16.mxu0 %v2304_v20  ;;  %v2330_v37 = vld [vmem:[#allocation5 + $0x3c4] ss:$16 sps:$4 sm:$0xff]   ;;  %v2333_v39 = vld [vmem:[#allocation5 + $0x3c0] ss:$16 sps:$4 sm:$0xff]  }
  0x38   :  { %1683 = vmatprep.subr.bf16.mxu1 %v2306_v21  ;;  %v2334_v40 = vld [vmem:[#allocation5 + $0x1a4] ss:$16 sps:$4 sm:$0xff]   ;;  %v2338_v42 = vld [vmem:[#allocation5 + $0x1a0] ss:$16 sps:$4 sm:$0xff]  }
  0x39   :  { %v2336_v41 = vld [vmem:[#allocation5 + $0x3a4] ss:$16 sps:$4 sm:$0xff]   ;;  %v2339_v43 = vld [vmem:[#allocation5 + $0x3a0] ss:$16 sps:$4 sm:$0xff]  }
  0x3a   :  { %1643 = vmatpush1.bf16.msra.mxu0 %v2308_v22  ;;  %v2340_v44 = vld [vmem:[#allocation5 + $0x184] ss:$16 sps:$4 sm:$0xff]   ;;  %v2344_v47 = vld [vmem:[#allocation5 + $0x180] ss:$16 sps:$4 sm:$0xff]  }
  0x3b   :  { %1684 = vmatpush1.bf16.msra.mxu1 %v2309_v23  ;;  %1644 = vmatprep.subr.bf16.mxu0 %v2310_v24  ;;  %v2342_v45 = vld [vmem:[#allocation5 + $0x384] ss:$16 sps:$4 sm:$0xff]   ;;  %v2345_v48 = vld [vmem:[#allocation5 + $0x380] ss:$16 sps:$4 sm:$0xff]  }
  0x3c   :  { %1685 = vmatprep.subr.bf16.mxu1 %v2312_v25  ;;  %v2346_v51 = vld [vmem:[#allocation5 + $0x164] ss:$16 sps:$4 sm:$0xff]   ;;  %v2350_v54 = vld [vmem:[#allocation5 + $0x160] ss:$16 sps:$4 sm:$0xff]  }
  0x3d   :  { %v2348_v53 = vld [vmem:[#allocation5 + $0x364] ss:$16 sps:$4 sm:$0xff]   ;;  %v2351_v55 = vld [vmem:[#allocation5 + $0x360] ss:$16 sps:$4 sm:$0xff]  }
  0x3e   :  { %1645 = vmatpush1.bf16.msra.mxu0 %v2314_v26  ;;  %v2352_v56 = vld [vmem:[#allocation5 + $0x144] ss:$16 sps:$4 sm:$0xff]   ;;  %v2356_v58 = vld [vmem:[#allocation5 + $0x140] ss:$16 sps:$4 sm:$0xff]  }
  0x3f   :  { %1686 = vmatpush1.bf16.msra.mxu1 %v2315_v27  ;;  %1646 = vmatprep.subr.bf16.mxu0 %v2316_v28  ;;  %v2354_v57 = vld [vmem:[#allocation5 + $0x344] ss:$16 sps:$4 sm:$0xff]   ;;  %v2357_v59 = vld [vmem:[#allocation5 + $0x340] ss:$16 sps:$4 sm:$0xff]  }
  0x40   :  { %1687 = vmatprep.subr.bf16.mxu1 %v2318_v29  ;;  %v2358_v60 = vld [vmem:[#allocation5 + $0x124] ss:$16 sps:$4 sm:$0xff]   ;;  %v2362_v62 = vld [vmem:[#allocation5 + $0x120] ss:$16 sps:$4 sm:$0xff]  }
  0x41   :  { %v2360_v61 = vld [vmem:[#allocation5 + $0x324] ss:$16 sps:$4 sm:$0xff]   ;;  %v2363_v63 = vld [vmem:[#allocation5 + $0x320] ss:$16 sps:$4 sm:$0xff]  }
  0x42   :  { %1647 = vmatpush1.bf16.msra.mxu0 %v2320_v30  ;;  %v2364_v0 = vld [vmem:[#allocation5 + $0x104] ss:$16 sps:$4 sm:$0xff]   ;;  %v2368_v2 = vld [vmem:[#allocation5 + $0x100] ss:$16 sps:$4 sm:$0xff]  }
  0x43   :  { %1688 = vmatpush1.bf16.msra.mxu1 %v2321_v31  ;;  %1648 = vmatprep.subr.bf16.mxu0 %v2322_v32  ;;  %v2366_v1 = vld [vmem:[#allocation5 + $0x304] ss:$16 sps:$4 sm:$0xff]   ;;  %v2369_v3 = vld [vmem:[#allocation5 + $0x300] ss:$16 sps:$4 sm:$0xff]  }
  0x44   :  { %1689 = vmatprep.subr.bf16.mxu1 %v2324_v33  ;;  %v58_v4 = vld [vmem:[#allocation3] sm:$0xff]  ;;  %v60_v5 = vld [vmem:[#allocation3 + $0x10] sm:$0xff] }
  0x45   :  { %v2372_v6 = vld [vmem:[#allocation5 + $0x4e4] ss:$16 sps:$4 sm:$0xff]   ;;  %v2776_v8 = vpack.c.bf16 %v58_v4, %v58_v4  ;;  %v2778_v9 = vpack.c.bf16 %v60_v5, %v60_v5  ;;  %v2370_v10 = vld [vmem:[#allocation5 + $0x4e0] ss:$16 sps:$4 sm:$0xff]  }
  0x46   :  { %1649 = vmatpush2.bf16.msra.mxu0 %v2326_v34  ;;  %v2375_v7 = vld [vmem:[#allocation5 + $0x6e4] ss:$16 sps:$4 sm:$0xff]   ;;  %v2373_v11 = vld [vmem:[#allocation5 + $0x6e0] ss:$16 sps:$4 sm:$0xff]   ;;  %v63_v34 = vld [vmem:[#allocation3 + $0x28] sm:$0xff] }
  0x47   :  { %1690 = vmatpush2.bf16.msra.mxu1 %v2327_v35  ;;  %1650 = vmatprep.subr.bf16.mxu0 %v2328_v36  ;;  %v2378_v12 = vld [vmem:[#allocation5 + $0x4c4] ss:$16 sps:$4 sm:$0xff]   ;;  %v2376_v14 = vld [vmem:[#allocation5 + $0x4c0] ss:$16 sps:$4 sm:$0xff]  }
  0x48   :  { %1691 = vmatprep.subr.bf16.mxu1 %v2330_v37  ;;  %v2381_v13 = vld [vmem:[#allocation5 + $0x6c4] ss:$16 sps:$4 sm:$0xff]   ;;  %v2379_v15 = vld [vmem:[#allocation5 + $0x6c0] ss:$16 sps:$4 sm:$0xff]   ;;  %v2782_v37 = vpack.c.bf16 %v63_v34, %v63_v34  ;;  %v2484_v34 = vld [vmem:[#allocation5 + $0x88] ss:$16 sps:$4 sm:$0xff]  }
  0x49   :  { %v2384_v16 = vld [vmem:[#allocation5 + $0x4a4] ss:$16 sps:$4 sm:$0xff]   ;;  %v2382_v18 = vld [vmem:[#allocation5 + $0x4a0] ss:$16 sps:$4 sm:$0xff]  }
  0x4a   :  { %1651 = vmatpush2.bf16.msra.mxu0 %v2332_v38  ;;  %v2387_v17 = vld [vmem:[#allocation5 + $0x6a4] ss:$16 sps:$4 sm:$0xff]   ;;  %v2385_v19 = vld [vmem:[#allocation5 + $0x6a0] ss:$16 sps:$4 sm:$0xff]   ;;  %v65_v38 = vld [vmem:[#allocation3 + $0x38] sm:$0xff] }
  0x4b   :  { %1692 = vmatpush2.bf16.msra.mxu1 %v2333_v39  ;;  %1652 = vmatprep.subr.bf16.mxu0 %v2334_v40  ;;  %v2390_v20 = vld [vmem:[#allocation5 + $0x484] ss:$16 sps:$4 sm:$0xff]   ;;  %v2388_v22 = vld [vmem:[#allocation5 + $0x480] ss:$16 sps:$4 sm:$0xff]   ;;  %v2784_v40 = vpack.c.bf16 %v65_v38, %v65_v38  ;;  %v2495_v38 = vld [vmem:[#allocation5 + $0x26c] ss:$16 sps:$4 sm:$0xff]  }
  0x4c   :  { %1693 = vmatprep.subr.bf16.mxu1 %v2336_v41  ;;  %v2393_v21 = vld [vmem:[#allocation5 + $0x684] ss:$16 sps:$4 sm:$0xff]   ;;  %v2391_v23 = vld [vmem:[#allocation5 + $0x680] ss:$16 sps:$4 sm:$0xff]  }
  0x4d   :  { %v2396_v24 = vld [vmem:[#allocation5 + $0x464] ss:$16 sps:$4 sm:$0xff]   ;;  %v2394_v26 = vld [vmem:[#allocation5 + $0x460] ss:$16 sps:$4 sm:$0xff]  }
  0x4e   :  { %1653 = vmatpush2.bf16.msra.mxu0 %v2338_v42  ;;  %v2399_v25 = vld [vmem:[#allocation5 + $0x664] ss:$16 sps:$4 sm:$0xff]   ;;  %v2397_v27 = vld [vmem:[#allocation5 + $0x660] ss:$16 sps:$4 sm:$0xff]  }
  0x4f   :  { %1694 = vmatpush2.bf16.msra.mxu1 %v2339_v43  ;;  %1654 = vmatprep.subr.bf16.mxu0 %v2340_v44  ;;  %v2402_v28 = vld [vmem:[#allocation5 + $0x444] ss:$16 sps:$4 sm:$0xff]   ;;  %v2400_v30 = vld [vmem:[#allocation5 + $0x440] ss:$16 sps:$4 sm:$0xff]  }
  0x50   :  { %1695 = vmatprep.subr.bf16.mxu1 %v2342_v45  ;;  %v2405_v29 = vld [vmem:[#allocation5 + $0x644] ss:$16 sps:$4 sm:$0xff]   ;;  %v2403_v31 = vld [vmem:[#allocation5 + $0x640] ss:$16 sps:$4 sm:$0xff]  }
  0x51   :  { %v2408_v32 = vld [vmem:[#allocation5 + $0x424] ss:$16 sps:$4 sm:$0xff]   ;;  %v2406_v35 = vld [vmem:[#allocation5 + $0x420] ss:$16 sps:$4 sm:$0xff]  }
  0x52   :  { %1655 = vmatpush2.bf16.msra.mxu0 %v2344_v47  ;;  %v2411_v33 = vld [vmem:[#allocation5 + $0x624] ss:$16 sps:$4 sm:$0xff]   ;;  %v2409_v36 = vld [vmem:[#allocation5 + $0x620] ss:$16 sps:$4 sm:$0xff]  }
  0x53   :  { %1696 = vmatpush2.bf16.msra.mxu1 %v2345_v48  ;;  %1656 = vmatprep.subr.bf16.mxu0 %v2346_v51  ;;  %v2414_v39 = vld [vmem:[#allocation5 + $0x404] ss:$16 sps:$4 sm:$0xff]   ;;  %v2412_v42 = vld [vmem:[#allocation5 + $0x400] ss:$16 sps:$4 sm:$0xff]  }
  0x54   :  { %1697 = vmatprep.subr.bf16.mxu1 %v2348_v53  ;;  %v2417_v41 = vld [vmem:[#allocation5 + $0x604] ss:$16 sps:$4 sm:$0xff]   ;;  %v2415_v43 = vld [vmem:[#allocation5 + $0x600] ss:$16 sps:$4 sm:$0xff]  }
  0x55   :  { %v2420_v44 = vld [vmem:[#allocation5 + $0x5e4] ss:$16 sps:$4 sm:$0xff]   ;;  %v2418_v46 = vld [vmem:[#allocation5 + $0x5e0] ss:$16 sps:$4 sm:$0xff]  }
  0x56   :  { %1657 = vmatpush2.bf16.msra.mxu0 %v2350_v54  ;;  %v2423_v45 = vld [vmem:[#allocation5 + $0x7e4] ss:$16 sps:$4 sm:$0xff]   ;;  %v2421_v47 = vld [vmem:[#allocation5 + $0x7e0] ss:$16 sps:$4 sm:$0xff]  }
  0x57   :  { %1698 = vmatpush2.bf16.msra.mxu1 %v2351_v55  ;;  %1658 = vmatprep.subr.bf16.mxu0 %v2352_v56  ;;  %v2426_v48 = vld [vmem:[#allocation5 + $0x5c4] ss:$16 sps:$4 sm:$0xff]   ;;  %v2424_v51 = vld [vmem:[#allocation5 + $0x5c0] ss:$16 sps:$4 sm:$0xff]  }
  0x58   :  { %1699 = vmatprep.subr.bf16.mxu1 %v2354_v57  ;;  %v2429_v50 = vld [vmem:[#allocation5 + $0x7c4] ss:$16 sps:$4 sm:$0xff]   ;;  %v2427_v53 = vld [vmem:[#allocation5 + $0x7c0] ss:$16 sps:$4 sm:$0xff]  }
  0x59   :  { %v2432_v54 = vld [vmem:[#allocation5 + $0x5a4] ss:$16 sps:$4 sm:$0xff]   ;;  %v2430_v56 = vld [vmem:[#allocation5 + $0x5a0] ss:$16 sps:$4 sm:$0xff]  }
  0x5a   :  { %1659 = vmatpush2.bf16.msra.mxu0 %v2356_v58  ;;  %v2435_v55 = vld [vmem:[#allocation5 + $0x7a4] ss:$16 sps:$4 sm:$0xff]   ;;  %v2433_v57 = vld [vmem:[#allocation5 + $0x7a0] ss:$16 sps:$4 sm:$0xff]  }
  0x5b   :  { %1700 = vmatpush2.bf16.msra.mxu1 %v2357_v59  ;;  %1660 = vmatprep.subr.bf16.mxu0 %v2358_v60  ;;  %v2438_v58 = vld [vmem:[#allocation5 + $0x584] ss:$16 sps:$4 sm:$0xff]   ;;  %v2436_v60 = vld [vmem:[#allocation5 + $0x580] ss:$16 sps:$4 sm:$0xff]  }
  0x5c   :  { %1701 = vmatprep.subr.bf16.mxu1 %v2360_v61  ;;  %v2441_v59 = vld [vmem:[#allocation5 + $0x784] ss:$16 sps:$4 sm:$0xff]   ;;  %v2439_v61 = vld [vmem:[#allocation5 + $0x780] ss:$16 sps:$4 sm:$0xff]  }
  0x5d   :  { %v2448_v4 = vld [vmem:[#allocation5 + $0x540] ss:$16 sps:$4 sm:$0xff]  }
  0x5e   :  { %1661 = vmatpush2.bf16.msra.mxu0 %v2362_v62  ;;  %v2444_v62 = vld [vmem:[#allocation5 + $0x564] ss:$16 sps:$4 sm:$0xff]   ;;  %v2451_v5 = vld [vmem:[#allocation5 + $0x740] ss:$16 sps:$4 sm:$0xff]  }
  0x5f   :  { %1702 = vmatpush2.bf16.msra.mxu1 %v2363_v63  ;;  %1662 = vmatprep.subr.bf16.mxu0 %v2364_v0  ;;  %v2447_v63 = vld [vmem:[#allocation5 + $0x764] ss:$16 sps:$4 sm:$0xff]   ;;  %v2442_v0 = vld [vmem:[#allocation5 + $0x560] ss:$16 sps:$4 sm:$0xff]  }
  0x60   :  { %1703 = vmatprep.subr.bf16.mxu1 %v2366_v1  ;;  %v2445_v1 = vld [vmem:[#allocation5 + $0x760] ss:$16 sps:$4 sm:$0xff]  }
  0x62   :  { %1663 = vmatpush2.bf16.msra.mxu0 %v2368_v2  ;;  %v2450_v2 = vld [vmem:[#allocation5 + $0x544] ss:$16 sps:$4 sm:$0xff]  }
  0x63   :  { %1704 = vmatpush2.bf16.msra.mxu1 %v2369_v3  ;;  %1714 = vmatprep.subr.bf16.mxu0 %v2372_v6  ;;  %v2453_v3 = vld [vmem:[#allocation5 + $0x744] ss:$16 sps:$4 sm:$0xff]  }
  0x64   :  { %1755 = vmatprep.subr.bf16.mxu1 %v2375_v7  ;;  %v2456_v6 = vld [vmem:[#allocation5 + $0x524] ss:$16 sps:$4 sm:$0xff]  }
  0x65   :  { %1665 = vmatmul.mubr.bf16.vlgmr.msra.gmra.mxu0 %v2776_v8  ;;  %v2459_v7 = vld [vmem:[#allocation5 + $0x724] ss:$16 sps:$4 sm:$0xff]  }
  0x66   :  { %1706 = vmatmul.mubr.bf16.vlgmr.msra.gmra.mxu1 %v2778_v9  ;;  %1715 = vmatpush1.bf16.msra.mxu0 %v2370_v10  ;;  %v2454_v10 = vld [vmem:[#allocation5 + $0x520] ss:$16 sps:$4 sm:$0xff]  }
  0x67   :  { %1756 = vmatpush1.bf16.msra.mxu1 %v2373_v11  ;;  %1716 = vmatprep.subr.bf16.mxu0 %v2378_v12  ;;  %v2457_v11 = vld [vmem:[#allocation5 + $0x720] ss:$16 sps:$4 sm:$0xff]   ;;  %v2462_v12 = vld [vmem:[#allocation5 + $0x504] ss:$16 sps:$4 sm:$0xff]  }
  0x68   :  { %1757 = vmatprep.subr.bf16.mxu1 %v2381_v13  ;;  %1746 = vmatprep.mubr.bf16.mxu0 %v2782_v37  ;;  %v2465_v13 = vld [vmem:[#allocation5 + $0x704] ss:$16 sps:$4 sm:$0xff]  }
  0x69   :  { %1787 = vmatprep.mubr.bf16.mxu1 %v2784_v40 }
  0x6a   :  { %1717 = vmatpush1.bf16.msra.mxu0 %v2376_v14  ;;  %v2460_v14 = vld [vmem:[#allocation5 + $0x500] ss:$16 sps:$4 sm:$0xff]  }
  0x6b   :  { %1758 = vmatpush1.bf16.msra.mxu1 %v2379_v15  ;;  %1718 = vmatprep.subr.bf16.mxu0 %v2384_v16  ;;  %v2463_v15 = vld [vmem:[#allocation5 + $0x700] ss:$16 sps:$4 sm:$0xff]  }
  0x6c   :  { %1759 = vmatprep.subr.bf16.mxu1 %v2387_v17  ;;  %v62_v16 = vld [vmem:[#allocation3 + $0x20] sm:$0xff]  ;;  %v64_v17 = vld [vmem:[#allocation3 + $0x30] sm:$0xff] }
  0x6e   :  { %1719 = vmatpush1.bf16.msra.mxu0 %v2382_v18  ;;  %v2468_v18 = vld [vmem:[#allocation5 + $0xec] ss:$16 sps:$4 sm:$0xff]  }
  0x6f   :  { %1760 = vmatpush1.bf16.msra.mxu1 %v2385_v19  ;;  %1720 = vmatprep.subr.bf16.mxu0 %v2390_v20  ;;  %v2471_v19 = vld [vmem:[#allocation5 + $0x2ec] ss:$16 sps:$4 sm:$0xff]   ;;  %v2788_v20 = vpack.c.bf16 %v62_v16, %v62_v16 }
  0x70   :  { %1761 = vmatprep.subr.bf16.mxu1 %v2393_v21  ;;  %v2790_v21 = vpack.c.bf16 %v64_v17, %v64_v17  ;;  %v2552_v16 = vld [vmem:[#allocation5 + $0x12c] ss:$16 sps:$4 sm:$0xff]  }
  0x71   :  { %v2555_v17 = vld [vmem:[#allocation5 + $0x32c] ss:$16 sps:$4 sm:$0xff]  }
  0x72   :  { %1721 = vmatpush1.bf16.msra.mxu0 %v2388_v22  ;;  %v2466_v22 = vld [vmem:[#allocation5 + $0xe8] ss:$16 sps:$4 sm:$0xff]  }
  0x73   :  { %1762 = vmatpush1.bf16.msra.mxu1 %v2391_v23  ;;  %1722 = vmatprep.subr.bf16.mxu0 %v2396_v24  ;;  %v2469_v23 = vld [vmem:[#allocation5 + $0x2e8] ss:$16 sps:$4 sm:$0xff]   ;;  %v2474_v24 = vld [vmem:[#allocation5 + $0xcc] ss:$16 sps:$4 sm:$0xff]  }
  0x74   :  { %1763 = vmatprep.subr.bf16.mxu1 %v2399_v25  ;;  %v2477_v25 = vld [vmem:[#allocation5 + $0x2cc] ss:$16 sps:$4 sm:$0xff]  }
  0x76   :  { %1723 = vmatpush1.bf16.msra.mxu0 %v2394_v26  ;;  %v2472_v26 = vld [vmem:[#allocation5 + $0xc8] ss:$16 sps:$4 sm:$0xff]  }
  0x77   :  { %1764 = vmatpush1.bf16.msra.mxu1 %v2397_v27  ;;  %1724 = vmatprep.subr.bf16.mxu0 %v2402_v28  ;;  %v2475_v27 = vld [vmem:[#allocation5 + $0x2c8] ss:$16 sps:$4 sm:$0xff]   ;;  %v2480_v28 = vld [vmem:[#allocation5 + $0xac] ss:$16 sps:$4 sm:$0xff]  }
  0x78   :  { %1765 = vmatprep.subr.bf16.mxu1 %v2405_v29  ;;  %v2483_v29 = vld [vmem:[#allocation5 + $0x2ac] ss:$16 sps:$4 sm:$0xff]  }
  0x7a   :  { %1725 = vmatpush1.bf16.msra.mxu0 %v2400_v30  ;;  %v2478_v30 = vld [vmem:[#allocation5 + $0xa8] ss:$16 sps:$4 sm:$0xff]  }
  0x7b   :  { %1766 = vmatpush1.bf16.msra.mxu1 %v2403_v31  ;;  %1726 = vmatprep.subr.bf16.mxu0 %v2408_v32  ;;  %v2481_v31 = vld [vmem:[#allocation5 + $0x2a8] ss:$16 sps:$4 sm:$0xff]   ;;  %v2486_v32 = vld [vmem:[#allocation5 + $0x8c] ss:$16 sps:$4 sm:$0xff]  }
  0x7c   :  { %1767 = vmatprep.subr.bf16.mxu1 %v2411_v33  ;;  %v2489_v33 = vld [vmem:[#allocation5 + $0x28c] ss:$16 sps:$4 sm:$0xff]  }
  0x7e   :  { %1727 = vmatpush1.bf16.msra.mxu0 %v2406_v35  ;;  %v2487_v35 = vld [vmem:[#allocation5 + $0x288] ss:$16 sps:$4 sm:$0xff]  }
  0x7f   :  { %1768 = vmatpush1.bf16.msra.mxu1 %v2409_v36  ;;  %1728 = vmatprep.subr.bf16.mxu0 %v2414_v39  ;;  %v2492_v36 = vld [vmem:[#allocation5 + $0x6c] ss:$16 sps:$4 sm:$0xff]   ;;  %v2490_v39 = vld [vmem:[#allocation5 + $0x68] ss:$16 sps:$4 sm:$0xff]  }
  0x80   :  { %1769 = vmatprep.subr.bf16.mxu1 %v2417_v41  ;;  %v2501_v41 = vld [vmem:[#allocation5 + $0x24c] ss:$16 sps:$4 sm:$0xff]  }
  0x82   :  { %1729 = vmatpush1.bf16.msra.mxu0 %v2412_v42  ;;  %v2496_v42 = vld [vmem:[#allocation5 + $0x48] ss:$16 sps:$4 sm:$0xff]  }
  0x83   :  { %1770 = vmatpush1.bf16.msra.mxu1 %v2415_v43  ;;  %1730 = vmatprep.subr.bf16.mxu0 %v2420_v44  ;;  %v2499_v43 = vld [vmem:[#allocation5 + $0x248] ss:$16 sps:$4 sm:$0xff]   ;;  %v2504_v44 = vld [vmem:[#allocation5 + $0x2c] ss:$16 sps:$4 sm:$0xff]  }
  0x84   :  { %1771 = vmatprep.subr.bf16.mxu1 %v2423_v45  ;;  %v2507_v45 = vld [vmem:[#allocation5 + $0x22c] ss:$16 sps:$4 sm:$0xff]  }
  0x86   :  { %1731 = vmatpush2.bf16.msra.mxu0 %v2418_v46  ;;  %v2502_v46 = vld [vmem:[#allocation5 + $0x28] ss:$16 sps:$4 sm:$0xff]  }
  0x87   :  { %1772 = vmatpush2.bf16.msra.mxu1 %v2421_v47  ;;  %1732 = vmatprep.subr.bf16.mxu0 %v2426_v48  ;;  %v2505_v47 = vld [vmem:[#allocation5 + $0x228] ss:$16 sps:$4 sm:$0xff]   ;;  %v2510_v48 = vld [vmem:[#allocation5 + $0xc] ss:$16 sps:$4 sm:$0xff]  }
  0x88   :  { %1773 = vmatprep.subr.bf16.mxu1 %v2429_v50  ;;  %v2513_v50 = vld [vmem:[#allocation5 + $0x20c] ss:$16 sps:$4 sm:$0xff]  }
  0x8a   :  { %1733 = vmatpush2.bf16.msra.mxu0 %v2424_v51  ;;  %v2508_v51 = vld [vmem:[#allocation5 + $0x8] ss:$16 sps:$4 sm:$0xff]  }
  0x8b   :  { %1774 = vmatpush2.bf16.msra.mxu1 %v2427_v53  ;;  %1734 = vmatprep.subr.bf16.mxu0 %v2432_v54  ;;  %v2511_v53 = vld [vmem:[#allocation5 + $0x208] ss:$16 sps:$4 sm:$0xff]   ;;  %v2516_v54 = vld [vmem:[#allocation5 + $0x1ec] ss:$16 sps:$4 sm:$0xff]  }
  0x8c   :  { %1775 = vmatprep.subr.bf16.mxu1 %v2435_v55  ;;  %v2519_v55 = vld [vmem:[#allocation5 + $0x3ec] ss:$16 sps:$4 sm:$0xff]  }
  0x8e   :  { %1735 = vmatpush2.bf16.msra.mxu0 %v2430_v56  ;;  %v2514_v56 = vld [vmem:[#allocation5 + $0x1e8] ss:$16 sps:$4 sm:$0xff]  }
  0x8f   :  { %1776 = vmatpush2.bf16.msra.mxu1 %v2433_v57  ;;  %1736 = vmatprep.subr.bf16.mxu0 %v2438_v58  ;;  %v2517_v57 = vld [vmem:[#allocation5 + $0x3e8] ss:$16 sps:$4 sm:$0xff]   ;;  %v2522_v58 = vld [vmem:[#allocation5 + $0x1cc] ss:$16 sps:$4 sm:$0xff]  }
  0x90   :  { %1777 = vmatprep.subr.bf16.mxu1 %v2441_v59  ;;  %v2525_v59 = vld [vmem:[#allocation5 + $0x3cc] ss:$16 sps:$4 sm:$0xff]  }
  0x92   :  { %1737 = vmatpush2.bf16.msra.mxu0 %v2436_v60  ;;  %v2520_v60 = vld [vmem:[#allocation5 + $0x1c8] ss:$16 sps:$4 sm:$0xff]  }
  0x93   :  { %1778 = vmatpush2.bf16.msra.mxu1 %v2439_v61  ;;  %1738 = vmatprep.subr.bf16.mxu0 %v2444_v62  ;;  %v2523_v61 = vld [vmem:[#allocation5 + $0x3c8] ss:$16 sps:$4 sm:$0xff]   ;;  %v2528_v62 = vld [vmem:[#allocation5 + $0x1ac] ss:$16 sps:$4 sm:$0xff]  }
  0x94   :  { %1779 = vmatprep.subr.bf16.mxu1 %v2447_v63  ;;  %v2531_v63 = vld [vmem:[#allocation5 + $0x3ac] ss:$16 sps:$4 sm:$0xff]  }
  0x96   :  { %1739 = vmatpush2.bf16.msra.mxu0 %v2442_v0  ;;  %v2526_v0 = vld [vmem:[#allocation5 + $0x1a8] ss:$16 sps:$4 sm:$0xff]  }
  0x97   :  { %1780 = vmatpush2.bf16.msra.mxu1 %v2445_v1  ;;  %1740 = vmatprep.subr.bf16.mxu0 %v2450_v2  ;;  %v2529_v1 = vld [vmem:[#allocation5 + $0x3a8] ss:$16 sps:$4 sm:$0xff]   ;;  %v2534_v2 = vld [vmem:[#allocation5 + $0x18c] ss:$16 sps:$4 sm:$0xff]  }
  0x98   :  { %1781 = vmatprep.subr.bf16.mxu1 %v2453_v3  ;;  %v2537_v3 = vld [vmem:[#allocation5 + $0x38c] ss:$16 sps:$4 sm:$0xff]  }
  0x9a   :  { %1741 = vmatpush2.bf16.msra.mxu0 %v2448_v4  ;;  %v2532_v4 = vld [vmem:[#allocation5 + $0x188] ss:$16 sps:$4 sm:$0xff]  }
  0x9b   :  { %1782 = vmatpush2.bf16.msra.mxu1 %v2451_v5  ;;  %1742 = vmatprep.subr.bf16.mxu0 %v2456_v6  ;;  %v2535_v5 = vld [vmem:[#allocation5 + $0x388] ss:$16 sps:$4 sm:$0xff]   ;;  %v2540_v6 = vld [vmem:[#allocation5 + $0x16c] ss:$16 sps:$4 sm:$0xff]  }
  0x9c   :  { %1783 = vmatprep.subr.bf16.mxu1 %v2459_v7  ;;  %v2543_v7 = vld [vmem:[#allocation5 + $0x36c] ss:$16 sps:$4 sm:$0xff]  }
  0x9e   :  { %1743 = vmatpush2.bf16.msra.mxu0 %v2454_v10  ;;  %v2538_v10 = vld [vmem:[#allocation5 + $0x168] ss:$16 sps:$4 sm:$0xff]  }
  0x9f   :  { %1784 = vmatpush2.bf16.msra.mxu1 %v2457_v11  ;;  %1744 = vmatprep.subr.bf16.mxu0 %v2462_v12  ;;  %v2541_v11 = vld [vmem:[#allocation5 + $0x368] ss:$16 sps:$4 sm:$0xff]   ;;  %v2546_v12 = vld [vmem:[#allocation5 + $0x14c] ss:$16 sps:$4 sm:$0xff]  }
  0xa0   :  { %1785 = vmatprep.subr.bf16.mxu1 %v2465_v13  ;;  %v2549_v13 = vld [vmem:[#allocation5 + $0x34c] ss:$16 sps:$4 sm:$0xff]  }
  0xa2   :  { %1745 = vmatpush2.bf16.msra.mxu0 %v2460_v14  ;;  %v2544_v14 = vld [vmem:[#allocation5 + $0x148] ss:$16 sps:$4 sm:$0xff]  }
  0xa3   :  { %1786 = vmatpush2.bf16.msra.mxu1 %v2463_v15  ;;  %1796 = vmatprep.subr.bf16.mxu0 %v2468_v18  ;;  %v2547_v15 = vld [vmem:[#allocation5 + $0x348] ss:$16 sps:$4 sm:$0xff]  }
  0xa4   :  { %1837 = vmatprep.subr.bf16.mxu1 %v2471_v19  ;;  %v2550_v18 = vld [vmem:[#allocation5 + $0x128] ss:$16 sps:$4 sm:$0xff]  }
  0xa5   :  { %1747 = vmatmul.mubr.bf16.vlgmr.msra.gmra.mxu0 %v2788_v20  ;;  %v2553_v19 = vld [vmem:[#allocation5 + $0x328] ss:$16 sps:$4 sm:$0xff]  }
  0xa6   :  { %1788 = vmatmul.mubr.bf16.vlgmr.msra.gmra.mxu1 %v2790_v21  ;;  %1797 = vmatpush1.bf16.msra.mxu0 %v2466_v22  ;;  %v2558_v22 = vld [vmem:[#allocation5 + $0x10c] ss:$16 sps:$4 sm:$0xff]  }
  0xa7   :  { %1838 = vmatpush1.bf16.msra.mxu1 %v2469_v23  ;;  %1798 = vmatprep.subr.bf16.mxu0 %v2474_v24  ;;  %v2561_v23 = vld [vmem:[#allocation5 + $0x30c] ss:$16 sps:$4 sm:$0xff]   ;;  %v2556_v24 = vld [vmem:[#allocation5 + $0x108] ss:$16 sps:$4 sm:$0xff]  }
  0xa8   :  { %1839 = vmatprep.subr.bf16.mxu1 %v2477_v25  ;;  %1828 = vmatprep.mubr.bf16.mxu0 %v2770_v49  ;;  %v2493_v49 = vld [vmem:[#allocation5 + $0x268] ss:$16 sps:$4 sm:$0xff]  }
  0xa9   :  { %1869 = vmatprep.mubr.bf16.mxu1 %v2772_v52  ;;  %v2498_v52 = vld [vmem:[#allocation5 + $0x4c] ss:$16 sps:$4 sm:$0xff]   ;;  %v2559_v25 = vld [vmem:[#allocation5 + $0x308] ss:$16 sps:$4 sm:$0xff]  }
  0xaa   :  { %1799 = vmatpush1.bf16.msra.mxu0 %v2472_v26  ;;  %v2564_v26 = vld [vmem:[#allocation5 + $0x4ec] ss:$16 sps:$4 sm:$0xff]  }
  0xab   :  { %1840 = vmatpush1.bf16.msra.mxu1 %v2475_v27  ;;  %1800 = vmatprep.subr.bf16.mxu0 %v2480_v28  ;;  %v2567_v27 = vld [vmem:[#allocation5 + $0x6ec] ss:$16 sps:$4 sm:$0xff]   ;;  %v2562_v28 = vld [vmem:[#allocation5 + $0x4e8] ss:$16 sps:$4 sm:$0xff]  }
  0xac   :  { %1841 = vmatprep.subr.bf16.mxu1 %v2483_v29  ;;  %v2565_v29 = vld [vmem:[#allocation5 + $0x6e8] ss:$16 sps:$4 sm:$0xff]  }
  0xae   :  { %1801 = vmatpush1.bf16.msra.mxu0 %v2478_v30  ;;  %v2570_v30 = vld [vmem:[#allocation5 + $0x4cc] ss:$16 sps:$4 sm:$0xff]  }
  0xaf   :  { %1842 = vmatpush1.bf16.msra.mxu1 %v2481_v31  ;;  %1802 = vmatprep.subr.bf16.mxu0 %v2486_v32  ;;  %v2573_v31 = vld [vmem:[#allocation5 + $0x6cc] ss:$16 sps:$4 sm:$0xff]   ;;  %v2568_v32 = vld [vmem:[#allocation5 + $0x4c8] ss:$16 sps:$4 sm:$0xff]  }
  0xb0   :  { %1843 = vmatprep.subr.bf16.mxu1 %v2489_v33  ;;  %v2571_v33 = vld [vmem:[#allocation5 + $0x6c8] ss:$16 sps:$4 sm:$0xff]  }
  0xb2   :  { %1803 = vmatpush1.bf16.msra.mxu0 %v2484_v34  ;;  %v2576_v34 = vld [vmem:[#allocation5 + $0x4ac] ss:$16 sps:$4 sm:$0xff]  }
  0xb3   :  { %1844 = vmatpush1.bf16.msra.mxu1 %v2487_v35  ;;  %1804 = vmatprep.subr.bf16.mxu0 %v2492_v36  ;;  %v2579_v35 = vld [vmem:[#allocation5 + $0x6ac] ss:$16 sps:$4 sm:$0xff]   ;;  %v2574_v36 = vld [vmem:[#allocation5 + $0x4a8] ss:$16 sps:$4 sm:$0xff]  }
  0xb4   :  { %1845 = vmatprep.subr.bf16.mxu1 %v2495_v38  ;;  %v2577_v38 = vld [vmem:[#allocation5 + $0x6a8] ss:$16 sps:$4 sm:$0xff]  }
  0xb6   :  { %1805 = vmatpush1.bf16.msra.mxu0 %v2490_v39  ;;  %v2580_v39 = vld [vmem:[#allocation5 + $0x488] ss:$16 sps:$4 sm:$0xff]  }
  0xb7   :  { %1846 = vmatpush1.bf16.msra.mxu1 %v2493_v49  ;;  %1806 = vmatprep.subr.bf16.mxu0 %v2498_v52  ;;  %v2583_v49 = vld [vmem:[#allocation5 + $0x688] ss:$16 sps:$4 sm:$0xff]   ;;  %v2588_v52 = vld [vmem:[#allocation5 + $0x46c] ss:$16 sps:$4 sm:$0xff]  }
  0xb8   :  { %1847 = vmatprep.subr.bf16.mxu1 %v2501_v41  ;;  %v2591_v41 = vld [vmem:[#allocation5 + $0x66c] ss:$16 sps:$4 sm:$0xff]  }
  0xba   :  { %1807 = vmatpush1.bf16.msra.mxu0 %v2496_v42  ;;  %v2594_v42 = vld [vmem:[#allocation5 + $0x44c] ss:$16 sps:$4 sm:$0xff]  }
  0xbb   :  { %1848 = vmatpush1.bf16.msra.mxu1 %v2499_v43  ;;  %1808 = vmatprep.subr.bf16.mxu0 %v2504_v44  ;;  %v2597_v43 = vld [vmem:[#allocation5 + $0x64c] ss:$16 sps:$4 sm:$0xff]   ;;  %v2592_v44 = vld [vmem:[#allocation5 + $0x448] ss:$16 sps:$4 sm:$0xff]  }
  0xbc   :  { %1849 = vmatprep.subr.bf16.mxu1 %v2507_v45  ;;  %v2595_v45 = vld [vmem:[#allocation5 + $0x648] ss:$16 sps:$4 sm:$0xff]  }
  0xbe   :  { %1809 = vmatpush1.bf16.msra.mxu0 %v2502_v46  ;;  %v2600_v46 = vld [vmem:[#allocation5 + $0x42c] ss:$16 sps:$4 sm:$0xff]  }
  0xbf   :  { %1850 = vmatpush1.bf16.msra.mxu1 %v2505_v47  ;;  %1810 = vmatprep.subr.bf16.mxu0 %v2510_v48  ;;  %v2603_v47 = vld [vmem:[#allocation5 + $0x62c] ss:$16 sps:$4 sm:$0xff]   ;;  %v2598_v48 = vld [vmem:[#allocation5 + $0x428] ss:$16 sps:$4 sm:$0xff]  }
  0xc0   :  { %1851 = vmatprep.subr.bf16.mxu1 %v2513_v50  ;;  %v2601_v50 = vld [vmem:[#allocation5 + $0x628] ss:$16 sps:$4 sm:$0xff]  }
  0xc2   :  { %1811 = vmatpush1.bf16.msra.mxu0 %v2508_v51  ;;  %v2606_v51 = vld [vmem:[#allocation5 + $0x40c] ss:$16 sps:$4 sm:$0xff]  }
  0xc3   :  { %1852 = vmatpush1.bf16.msra.mxu1 %v2511_v53  ;;  %1812 = vmatprep.subr.bf16.mxu0 %v2516_v54  ;;  %v2609_v53 = vld [vmem:[#allocation5 + $0x60c] ss:$16 sps:$4 sm:$0xff]   ;;  %v2604_v54 = vld [vmem:[#allocation5 + $0x408] ss:$16 sps:$4 sm:$0xff]  }
  0xc4   :  { %1853 = vmatprep.subr.bf16.mxu1 %v2519_v55  ;;  %v2607_v55 = vld [vmem:[#allocation5 + $0x608] ss:$16 sps:$4 sm:$0xff]  }
  0xc6   :  { %1813 = vmatpush2.bf16.msra.mxu0 %v2514_v56  ;;  %v2612_v56 = vld [vmem:[#allocation5 + $0x5ec] ss:$16 sps:$4 sm:$0xff]  }
  0xc7   :  { %1854 = vmatpush2.bf16.msra.mxu1 %v2517_v57  ;;  %1814 = vmatprep.subr.bf16.mxu0 %v2522_v58  ;;  %v2615_v57 = vld [vmem:[#allocation5 + $0x7ec] ss:$16 sps:$4 sm:$0xff]   ;;  %v2610_v58 = vld [vmem:[#allocation5 + $0x5e8] ss:$16 sps:$4 sm:$0xff]  }
  0xc8   :  { %1855 = vmatprep.subr.bf16.mxu1 %v2525_v59  ;;  %v2613_v59 = vld [vmem:[#allocation5 + $0x7e8] ss:$16 sps:$4 sm:$0xff]  }
  0xca   :  { %1815 = vmatpush2.bf16.msra.mxu0 %v2520_v60  ;;  %v2618_v60 = vld [vmem:[#allocation5 + $0x5cc] ss:$16 sps:$4 sm:$0xff]  }
  0xcb   :  { %1856 = vmatpush2.bf16.msra.mxu1 %v2523_v61  ;;  %1816 = vmatprep.subr.bf16.mxu0 %v2528_v62  ;;  %v2621_v61 = vld [vmem:[#allocation5 + $0x7cc] ss:$16 sps:$4 sm:$0xff]   ;;  %v2616_v62 = vld [vmem:[#allocation5 + $0x5c8] ss:$16 sps:$4 sm:$0xff]  }
  0xcc   :  { %1857 = vmatprep.subr.bf16.mxu1 %v2531_v63  ;;  %v2619_v63 = vld [vmem:[#allocation5 + $0x7c8] ss:$16 sps:$4 sm:$0xff]  }
  0xce   :  { %1817 = vmatpush2.bf16.msra.mxu0 %v2526_v0  ;;  %v2624_v0 = vld [vmem:[#allocation5 + $0x5ac] ss:$16 sps:$4 sm:$0xff]  }
  0xcf   :  { %1858 = vmatpush2.bf16.msra.mxu1 %v2529_v1  ;;  %1818 = vmatprep.subr.bf16.mxu0 %v2534_v2  ;;  %v2627_v1 = vld [vmem:[#allocation5 + $0x7ac] ss:$16 sps:$4 sm:$0xff]   ;;  %v2622_v2 = vld [vmem:[#allocation5 + $0x5a8] ss:$16 sps:$4 sm:$0xff]  }
  0xd0   :  { %1859 = vmatprep.subr.bf16.mxu1 %v2537_v3  ;;  %v2625_v3 = vld [vmem:[#allocation5 + $0x7a8] ss:$16 sps:$4 sm:$0xff]  }
  0xd2   :  { %1819 = vmatpush2.bf16.msra.mxu0 %v2532_v4  ;;  %v2630_v4 = vld [vmem:[#allocation5 + $0x58c] ss:$16 sps:$4 sm:$0xff]  }
  0xd3   :  { %1860 = vmatpush2.bf16.msra.mxu1 %v2535_v5  ;;  %1820 = vmatprep.subr.bf16.mxu0 %v2540_v6  ;;  %v2633_v5 = vld [vmem:[#allocation5 + $0x78c] ss:$16 sps:$4 sm:$0xff]   ;;  %v2628_v6 = vld [vmem:[#allocation5 + $0x588] ss:$16 sps:$4 sm:$0xff]  }
  0xd4   :  { %1861 = vmatprep.subr.bf16.mxu1 %v2543_v7  ;;  %v2631_v7 = vld [vmem:[#allocation5 + $0x788] ss:$16 sps:$4 sm:$0xff]  }
  0xd6   :  { %1821 = vmatpush2.bf16.msra.mxu0 %v2538_v10  ;;  %v2636_v10 = vld [vmem:[#allocation5 + $0x56c] ss:$16 sps:$4 sm:$0xff]  }
  0xd7   :  { %1862 = vmatpush2.bf16.msra.mxu1 %v2541_v11  ;;  %1822 = vmatprep.subr.bf16.mxu0 %v2546_v12  ;;  %v2639_v11 = vld [vmem:[#allocation5 + $0x76c] ss:$16 sps:$4 sm:$0xff]   ;;  %v2634_v12 = vld [vmem:[#allocation5 + $0x568] ss:$16 sps:$4 sm:$0xff]  }
  0xd8   :  { %1863 = vmatprep.subr.bf16.mxu1 %v2549_v13  ;;  %v2637_v13 = vld [vmem:[#allocation5 + $0x768] ss:$16 sps:$4 sm:$0xff]  }
  0xda   :  { %1823 = vmatpush2.bf16.msra.mxu0 %v2544_v14  ;;  %v2642_v14 = vld [vmem:[#allocation5 + $0x54c] ss:$16 sps:$4 sm:$0xff]  }
  0xdb   :  { %1864 = vmatpush2.bf16.msra.mxu1 %v2547_v15  ;;  %1824 = vmatprep.subr.bf16.mxu0 %v2552_v16  ;;  %v2645_v15 = vld [vmem:[#allocation5 + $0x74c] ss:$16 sps:$4 sm:$0xff]   ;;  %v2640_v16 = vld [vmem:[#allocation5 + $0x548] ss:$16 sps:$4 sm:$0xff]  }
  0xdc   :  { %1865 = vmatprep.subr.bf16.mxu1 %v2555_v17  ;;  %v2643_v17 = vld [vmem:[#allocation5 + $0x748] ss:$16 sps:$4 sm:$0xff]  }
  0xde   :  { %1825 = vmatpush2.bf16.msra.mxu0 %v2550_v18  ;;  %v332_v18 = vlaneseq }
  0xdf   :  { %1866 = vmatpush2.bf16.msra.mxu1 %v2553_v19  ;;  %1826 = vmatprep.subr.bf16.mxu0 %v2558_v22  ;;  %v2648_v19 = vld [vmem:[#allocation5 + $0x52c] ss:$16 sps:$4 sm:$0xff]  }
  0xe0   :  { %1867 = vmatprep.subr.bf16.mxu1 %v2561_v23  ;;  %v2651_v22 = vld [vmem:[#allocation5 + $0x72c] ss:$16 sps:$4 sm:$0xff]   ;;  %v2646_v23 = vld [vmem:[#allocation5 + $0x528] ss:$16 sps:$4 sm:$0xff]  }
  0xe2   :  { %1827 = vmatpush2.bf16.msra.mxu0 %v2556_v24  ;;  %v2649_v24 = vld [vmem:[#allocation5 + $0x728] ss:$16 sps:$4 sm:$0xff]  }
  0xe3   :  { %1868 = vmatpush2.bf16.msra.mxu1 %v2559_v25  ;;  %1878 = vmatprep.subr.bf16.mxu0 %v2564_v26  ;;  %v2800_v25 = vshrl.u32 %v332_v18, 7  ;;  %v2654_v26 = vld [vmem:[#allocation5 + $0x50c] ss:$16 sps:$4 sm:$0xff]  }
  0xe4   :  { %1919 = vmatprep.subr.bf16.mxu1 %v2567_v27  ;;  %v2657_v27 = vld [vmem:[#allocation5 + $0x70c] ss:$16 sps:$4 sm:$0xff]  }
  0xe5   :  { %1829 = vmatmul.mubr.bf16.vlgmr.msra.gmra.mxu0 %v2776_v8  ;;  %v2582_v8 = vld [vmem:[#allocation5 + $0x48c] ss:$16 sps:$4 sm:$0xff]  }
  0xe6   :  { %1870 = vmatmul.mubr.bf16.vlgmr.msra.gmra.mxu1 %v2778_v9  ;;  %1879 = vmatpush1.bf16.msra.mxu0 %v2562_v28  ;;  %v2585_v9 = vld [vmem:[#allocation5 + $0x68c] ss:$16 sps:$4 sm:$0xff]   ;;  %v2652_v28 = vld [vmem:[#allocation5 + $0x508] ss:$16 sps:$4 sm:$0xff]  }
  0xe7   :  { %1920 = vmatpush1.bf16.msra.mxu1 %v2565_v29  ;;  %1880 = vmatprep.subr.bf16.mxu0 %v2570_v30  ;;  %v2655_v29 = vld [vmem:[#allocation5 + $0x708] ss:$16 sps:$4 sm:$0xff]   ;;  %v334_v30 = vsub.s32 0, %v2800_v25 }
  0xe8   :  { %1921 = vmatprep.subr.bf16.mxu1 %v2573_v31  ;;  %1910 = vmatprep.mubr.bf16.mxu0 %v2782_v37  ;;  %v2586_v37 = vld [vmem:[#allocation5 + $0x468] ss:$16 sps:$4 sm:$0xff]   ;;  %v330_v31 = vld [vmem:[%s2819_s2] sm:$0xf] }
  0xe9   :  { %1951 = vmatprep.mubr.bf16.mxu1 %v2784_v40  ;;  %v2589_v40 = vld [vmem:[#allocation5 + $0x668] ss:$16 sps:$4 sm:$0xff]  }
  0xea   :  { %1881 = vmatpush1.bf16.msra.mxu0 %v2568_v32  ;;  %v338_v32 = vsub.s32 1, %v2800_v25 }
  0xeb   :  { %1922 = vmatpush1.bf16.msra.mxu1 %v2571_v33  ;;  %1882 = vmatprep.subr.bf16.mxu0 %v2576_v34  ;;  %v335_v33 = vrot.slane %v330_v31, %v334_v30 }
  0xec   :  { %1923 = vmatprep.subr.bf16.mxu1 %v2579_v35  ;;  %v339_v34 = vrot.slane %v330_v31, %v338_v32 }
  0xee   :  { %1883 = vmatpush1.bf16.msra.mxu0 %v2574_v36 }
  0xef   :  { %1924 = vmatpush1.bf16.msra.mxu1 %v2577_v38  ;;  %1884 = vmatprep.subr.bf16.mxu0 %v2582_v8 }
  0xf0   :  { %1925 = vmatprep.subr.bf16.mxu1 %v2585_v9 }
  0xf2   :  { %1885 = vmatpush1.bf16.msra.mxu0 %v2580_v39 }
  0xf3   :  { %1926 = vmatpush1.bf16.msra.mxu1 %v2583_v49  ;;  %1886 = vmatprep.subr.bf16.mxu0 %v2588_v52 }
  0xf4   :  { %1927 = vmatprep.subr.bf16.mxu1 %v2591_v41 }
  0xf6   :  { %1887 = vmatpush1.bf16.msra.mxu0 %v2586_v37 }
  0xf7   :  { %1928 = vmatpush1.bf16.msra.mxu1 %v2589_v40  ;;  %1888 = vmatprep.subr.bf16.mxu0 %v2594_v42 }
  0xf8   :  { %1929 = vmatprep.subr.bf16.mxu1 %v2597_v43 }
  0xfa   :  { %1889 = vmatpush1.bf16.msra.mxu0 %v2592_v44 }
  0xfb   :  { %1930 = vmatpush1.bf16.msra.mxu1 %v2595_v45  ;;  %1890 = vmatprep.subr.bf16.mxu0 %v2600_v46  ;;  %v1964_v46 = vld [vmem:[#allocation7] sm:$0xf] }
  0xfc   :  { %1931 = vmatprep.subr.bf16.mxu1 %v2603_v47 }
  0xfe   :  { %1891 = vmatpush1.bf16.msra.mxu0 %v2598_v48 }
  0xff   :  { %1932 = vmatpush1.bf16.msra.mxu1 %v2601_v50  ;;  %1892 = vmatprep.subr.bf16.mxu0 %v2606_v51 }
 0x100   :  { %1933 = vmatprep.subr.bf16.mxu1 %v2609_v53 }
 0x102   :  { %1893 = vmatpush1.bf16.msra.mxu0 %v2604_v54  ;;  %v1969_v54 = vrot.slane %v1964_v46, %v334_v30 }
 0x103   :  { %1934 = vmatpush1.bf16.msra.mxu1 %v2607_v55  ;;  %1894 = vmatprep.subr.bf16.mxu0 %v2612_v56  ;;  %v1973_v56 = vrot.slane %v1964_v46, %v338_v32 }
 0x104   :  { %1935 = vmatprep.subr.bf16.mxu1 %v2615_v57 }
 0x106   :  { %1895 = vmatpush2.bf16.msra.mxu0 %v2610_v58 }
 0x107   :  { %1936 = vmatpush2.bf16.msra.mxu1 %v2613_v59  ;;  %1896 = vmatprep.subr.bf16.mxu0 %v2618_v60 }
 0x108   :  { %1937 = vmatprep.subr.bf16.mxu1 %v2621_v61 }
 0x10a   :  { %1897 = vmatpush2.bf16.msra.mxu0 %v2616_v62 }
 0x10b   :  { %1938 = vmatpush2.bf16.msra.mxu1 %v2619_v63  ;;  %1898 = vmatprep.subr.bf16.mxu0 %v2624_v0 }
 0x10c   :  { %1939 = vmatprep.subr.bf16.mxu1 %v2627_v1 }
 0x10e   :  { %1899 = vmatpush2.bf16.msra.mxu0 %v2622_v2 }
 0x10f   :  { %1940 = vmatpush2.bf16.msra.mxu1 %v2625_v3  ;;  %1900 = vmatprep.subr.bf16.mxu0 %v2630_v4 }
 0x110   :  { %1941 = vmatprep.subr.bf16.mxu1 %v2633_v5 }
 0x112   :  { %1901 = vmatpush2.bf16.msra.mxu0 %v2628_v6 }
 0x113   :  { %1942 = vmatpush2.bf16.msra.mxu1 %v2631_v7  ;;  %1902 = vmatprep.subr.bf16.mxu0 %v2636_v10  ;;  %v342_v7 = vsub.s32 2, %v2800_v25  ;;  %v346_v10 = vsub.s32 3, %v2800_v25 }
 0x114   :  { %1943 = vmatprep.subr.bf16.mxu1 %v2639_v11 }
 0x115   :  { %v343_v11 = vrot.slane %v330_v31, %v342_v7 }
 0x116   :  { %1903 = vmatpush2.bf16.msra.mxu0 %v2634_v12  ;;  %v347_v12 = vrot.slane %v330_v31, %v346_v10 }
 0x117   :  { %1944 = vmatpush2.bf16.msra.mxu1 %v2637_v13  ;;  %1904 = vmatprep.subr.bf16.mxu0 %v2642_v14 }
 0x118   :  { %1945 = vmatprep.subr.bf16.mxu1 %v2645_v15 }
 0x11a   :  { %1905 = vmatpush2.bf16.msra.mxu0 %v2640_v16 }
 0x11b   :  { %1946 = vmatpush2.bf16.msra.mxu1 %v2643_v17  ;;  %1906 = vmatprep.subr.bf16.mxu0 %v2648_v19 }
 0x11c   :  { %1947 = vmatprep.subr.bf16.mxu1 %v2651_v22 }
 0x11e   :  { %1907 = vmatpush2.bf16.msra.mxu0 %v2646_v23 }
 0x11f   :  { %1948 = vmatpush2.bf16.msra.mxu1 %v2649_v24  ;;  %1908 = vmatprep.subr.bf16.mxu0 %v2654_v26  ;;  %v1977_v26 = vrot.slane %v1964_v46, %v342_v7 }
 0x120   :  { %1949 = vmatprep.subr.bf16.mxu1 %v2657_v27 }
 0x122   :  { %1909 = vmatpush2.bf16.msra.mxu0 %v2652_v28 }
 0x123   :  { %1950 = vmatpush2.bf16.msra.mxu1 %v2655_v29 }
 0x125   :  { %v1666_v35 = vpop.f32.mrf.mxu0  ;;  %1911 = vmatmul.mubr.bf16.vlgmr.msra.gmra.mxu0 %v2788_v20 }
 0x126   :  { %v1707_v36 = vpop.f32.mrf.mxu1  ;;  %1952 = vmatmul.mubr.bf16.vlgmr.msra.gmra.mxu1 %v2790_v21  ;;  %v1667_v38 = vadd.f32 %v1666_v35, %v335_v33  ;;  %v1981_v33 = vrot.slane %v1964_v46, %v346_v10 }
 0x127   :  { %v1668_v8 = vpop.f32.mrf.mxu0 }
 0x128   :  { %v1709_v9 = vpop.f32.mrf.mxu1  ;;  %v1708_v39 = vadd.f32 %v1707_v36, %v1667_v38  ;;  %v1669_v49 = vadd.f32 %v1668_v8, %v339_v34 }
 0x129   :  { %v1670_v52 = vpop.f32.mrf.mxu0 }
 0x12a   :  { %v1711_v41 = vpop.f32.mrf.mxu1  ;;  %v1710_v37 = vadd.f32 %v1709_v9, %v1669_v49  ;;  %v1996_v9 = vstv %s2821_s4 }
 0x12b   :  { %v1671_v40 = vpop.f32.mrf.mxu0 }
 0x12c   :  { %v1712_v42 = vpop.f32.mrf.mxu1 }
 0x165   :  { %v1748_v43 = vpop.f32.mrf.mxu0 }
 0x166   :  { %v1789_v44 = vpop.f32.mrf.mxu1  ;;  %v1749_v45 = vadd.f32 %v1748_v43, %v1708_v39 }
 0x167   :  { %v1750_v47 = vpop.f32.mrf.mxu0 }
 0x168   :  { %v1791_v48 = vpop.f32.mrf.mxu1  ;;  %v1790_v50 = vadd.f32 %v1789_v44, %v1749_v45  ;;  %v1751_v20 = vadd.f32 %v1750_v47, %v1710_v37 }
 0x169   :  { %v1752_v51 = vpop.f32.mrf.mxu0 }
 0x16a   :  { %v1793_v21 = vpop.f32.mrf.mxu1  ;;  %v1960_v53 = vmax.f32 %v1790_v50, 0.0  ;;  %v1792_v55 = vadd.f32 %v1791_v48, %v1751_v20 }
 0x16b   :  { %v1753_v57 = vpop.f32.mrf.mxu0 }
 0x16c   :  { %v1794_v58 = vpop.f32.mrf.mxu1  ;;  %v1961_v59 = vmax.f32 %v1792_v55, 0.0  ;;  %v1986_v60 = vmul.f32 %v1969_v54, %v1960_v53 }
 0x16e   :  { %v1987_v61 = vmul.f32 %v1973_v56, %v1961_v59 }
 0x170   :  { %v1990_v62 = vadd.f32 %v1987_v61, %v1986_v60 }
 0x1a5   :  { %v1830_v63 = vpop.f32.mrf.mxu0 }
 0x1a6   :  { %v1871_v0 = vpop.f32.mrf.mxu1  ;;  %v1831_v13 = vadd.f32 %v1830_v63, %v343_v11 }
 0x1a7   :  { %v1832_v1 = vpop.f32.mrf.mxu0 }
 0x1a8   :  { %v1873_v2 = vpop.f32.mrf.mxu1  ;;  %v1833_v14 = vadd.f32 %v1832_v1, %v347_v12  ;;  %v1872_v15 = vadd.f32 %v1871_v0, %v1831_v13 }
 0x1a9   :  { %v1834_v3 = vpop.f32.mrf.mxu0 }
 0x1aa   :  { %v1875_v4 = vpop.f32.mrf.mxu1  ;;  %v1874_v18 = vadd.f32 %v1873_v2, %v1833_v14 }
 0x1ab   :  { %v1835_v5 = vpop.f32.mrf.mxu0 }
 0x1ac   :  { %v1876_v6 = vpop.f32.mrf.mxu1 }
 0x1e5   :  { %v1912_v16 = vpop.f32.mrf.mxu0 }
 0x1e6   :  { %v1953_v17 = vpop.f32.mrf.mxu1  ;;  %v1913_v19 = vadd.f32 %v1912_v16, %v1872_v15 }
 0x1e7   :  { %v1914_v22 = vpop.f32.mrf.mxu0 }
 0x1e8   :  { %v1955_v23 = vpop.f32.mrf.mxu1  ;;  %v1954_v24 = vadd.f32 %v1953_v17, %v1913_v19  ;;  %v1915_v27 = vadd.f32 %v1914_v22, %v1874_v18 }
 0x1e9   :  { %v1916_v28 = vpop.f32.mrf.mxu0 }
 0x1ea   :  { %v1957_v29 = vpop.f32.mrf.mxu1  ;;  %v1962_v30 = vmax.f32 %v1954_v24, 0.0  ;;  %v1956_v32 = vadd.f32 %v1955_v23, %v1915_v27 }
 0x1eb   :  { %v1917_v25 = vpop.f32.mrf.mxu0 }
 0x1ec   :  { %v1958_v34 = vpop.f32.mrf.mxu1  ;;  %v1988_v31 = vmul.f32 %v1977_v26, %v1962_v30  ;;  %v1963_v35 = vmax.f32 %v1956_v32, 0.0 }
 0x1ee   :  { %v1989_v36 = vmul.f32 %v1981_v33, %v1963_v35  ;;  %v1991_v38 = vadd.f32 %v1990_v62, %v1988_v31 }
 0x1f0   :  { %v1992_v8 = vadd.f32 %v1991_v38, %v1989_v36 }
 0x1f2   :  { %1993 = vadd.xlane.f32.xlu0 %v1992_v8 }
 0x27b   :  { %v1994_v39 = vpop.xlane.xlu0 %1993 }
 0x27c   :  { %v1997_v49 = vadd.f32 %v1996_v9, %v1994_v39 }
 0x27e   :  { %v2268_v52 = vmul.f32 -1.442695, %v1997_v49 }
 0x280   :  { %2658 = vpow2.f32 %v2268_v52 }
 0x28d   :  { %v2659_v41 = vpop.eup %2658 }
 0x28e   :  { %v2001_v37 = vadd.f32 1.0, %v2659_v41 }
 0x290   :  { %2660 = vrcp.f32 %v2001_v37 }
 0x29d   :  { %v2661_v40 = vpop.eup %2660 }
 0x29e   :  { %2005 = vst.msk [vmem:[%s2822_s5] sm:$0xff] %vm2004_vm0, %v2661_v40 }
 0x29f   :  { %2010 = vsyncpa [#allocation4], 1 }
 0x2a0   :  { %2011 = vsyncpa [#allocation6], 1 }

</bundles_post_ra>
